<compile_context>
chip_gen: v6e
topology: v6e:2x2x1
jax: 0.10.0
libtpu: 0.0.40
codegen_flags: <defaults>
</compile_context>

<pallas_src>
import jax
import jax.numpy as jnp
from jax.experimental import pallas as pl
from jax.experimental.pallas import tpu as pltpu


_LANE = 128
# Below this total size, a standalone kernel cannot beat XLA fusion into the
# consumer (launch + ~0.35us/grid-step overhead dominate).
_MIN_PALLAS_BYTES = 1 * 1024 * 1024
# If a *forced* full-extent tile (non-128-aligned huge dim) exceeds this, hand
# the copy back to XLA instead of risking a VMEM OOM with 4 live buffers.
_FALLBACK_BLOCK_BYTES = 4 * 1024 * 1024
# Explicit scoped-VMEM budget: 4 buffers x 4 MiB blocks + internal scratch fits
# comfortably, and 32 MiB is within every generation's physical VMEM.
_VMEM_LIMIT_BYTES = 32 * 1024 * 1024


def _per_block_budget_bytes() -> int:
    """Per-block byte budget: 4 MiB on v7x, 2 MiB on v5e/v6e."""
    try:
        kind = jax.devices()[0].device_kind.lower()
    except Exception:
        kind = ""
    if "v7" in kind:
        return 4 * 1024 * 1024
    return 2 * 1024 * 1024


def _transpose_kernel(x_ref, o_ref):
    # x_ref: (Bt, tL, tD) block in VMEM, o_ref: (Bt, tD, tL) block in VMEM.
    # Swap the minor dims of the whole VMEM-resident block: lowers to the XLU
    # transpose path, leaving VPU/MXU idle -> the kernel is HBM-bandwidth bound.
    # TODO(synk): if v7x bundle profiling shows the XLU (vxpose) slot binding,
    # switch bf16 inputs to an exact MXU identity-matmul transpose.
    o_ref[...] = jnp.swapaxes(x_ref[...], 1, 2)


def _tile_candidates(dim: int) -> list:
    """Legal tile sizes for one of the swapped dims, largest first.

    A tile is legal if it is a multiple of 128 (satisfies the (8,128) BlockSpec
    rule in both the input and the swapped output block) or equals the full
    dim.  Only divisors are considered so the grid covers the dim exactly.
    """
    cands = {dim}
    for d in range(_LANE, dim, _LANE):
        if dim % d == 0:
            cands.add(d)
    return sorted(cands, reverse=True)


def _pick_tiles(L: int, D: int, itemsize: int, budget: int):
    """Choose (tL, tD), biasing the byte budget toward tL.

    tL is the *output* block's last dim: keeping it large gives lane-dense,
    unmasked `vst` stores and long output HBM writeback rows (the single
    biggest measured lever).  tD only needs to keep input DMA rows reasonable.
    """
    cands_l = _tile_candidates(L)
    cands_d = _tile_candidates(D)
    # Floor for tD when splitting the budget (<=512 lanes is already near the
    # input-read roofline); the final tD below grows back into leftover budget.
    le512 = [c for c in cands_d if c <= 512]
    td_floor = le512[0] if le512 else cands_d[-1]
    tl = next((c for c in cands_l if c * td_floor * itemsize <= budget),
              cands_l[-1])
    td = next((c for c in cands_d if tl * c * itemsize <= budget),
              cands_d[-1])
    return tl, td


def _pick_batch_fold(batch: int, tile_bytes: int, budget: int) -> int:
    """Largest divisor of `batch` keeping one (Bt, tL, tD) block within budget."""
    cap = max(1, min(batch, budget // max(tile_bytes, 1)))
    for bt in range(cap, 0, -1):
        if batch % bt == 0:
            return bt
    return 1


def pallas_transpose_1_2(x: jax.Array) -> jax.Array:
    """Equivalent of torch `x.transpose(1, 2).contiguous()` for a 3-D array."""
    assert x.ndim == 3, "kernel implements the 3-D Transpose(1, 2) case"
    B, L, D = x.shape
    itemsize = jnp.dtype(x.dtype).itemsize
    total_bytes = B * L * D * itemsize

    # Fallbacks where a standalone Pallas kernel cannot win:
    #  * L < 128: output last dim narrower than a lane -> masked partial stores
    #    and tiny output DMA rows (the typical PatchTST hot case, L ~ 32-64;
    #    XLA fuses the transpose into the consumer dot_general for free).
    #  * tiny tensors: launch + per-grid-step overhead dominate.
    if B == 0 or L == 0 or D == 0 or L < _LANE or total_bytes < _MIN_PALLAS_BYTES:
        return jnp.swapaxes(x, 1, 2)

    budget = _per_block_budget_bytes()
    tL, tD = _pick_tiles(L, D, itemsize, budget)
    tile_bytes = tL * tD * itemsize

    if tile_bytes > _FALLBACK_BLOCK_BYTES:
        # A huge non-128-aligned dim forces a full-extent block too big for a
        # safe double-buffered in+out VMEM footprint -> let XLA handle it.
        return jnp.swapaxes(x, 1, 2)

    Bt = _pick_batch_fold(B, tile_bytes, budget)
    grid = (B // Bt, L // tL, D // tD)

    return pl.pallas_call(
        _transpose_kernel,
        out_shape=jax.ShapeDtypeStruct((B, D, L), x.dtype),
        grid_spec=pltpu.PrefetchScalarGridSpec(
            num_scalar_prefetch=0,
            grid=grid,
            in_specs=[pl.BlockSpec((Bt, tL, tD), lambda b, i, j: (b, i, j))],
            out_specs=pl.BlockSpec((Bt, tD, tL), lambda b, i, j: (b, j, i)),
        ),
        compiler_params=pltpu.CompilerParams(
            dimension_semantics=("parallel", "parallel", "parallel"),
            vmem_limit_bytes=_VMEM_LIMIT_BYTES,
        ),
        cost_estimate=pl.CostEstimate(
            flops=0,
            transcendentals=0,
            bytes_accessed=2 * total_bytes,
        ),
    )(x)


class Transpose:
    """JAX/Pallas port of the PyTorch Transpose(nn.Module)."""

    def __init__(self, *dims, contiguous: bool = False):
        self.dims = dims
        self.contiguous = contiguous  # no-op in JAX (output is always contiguous)

    def __call__(self, x: jax.Array) -> jax.Array:
        d0, d1 = self.dims
        d0 = d0 % x.ndim
        d1 = d1 % x.ndim
        if x.ndim == 3 and {d0, d1} == {1, 2}:
            # Hot path (PatchTST usage) implemented as a Pallas TPU kernel
            # (with explicit small/narrow-L fallbacks to XLA).
            return pallas_transpose_1_2(x)
        # Other dim patterns: pure glue, no compute worth a kernel.
        return jnp.swapaxes(x, d0, d1)


if __name__ == "__main__":
    key = jax.random.PRNGKey(0)
    module = Transpose(1, 2, contiguous=True)

    # 1) PatchTST-like small shape: L < 128 and tiny -> deliberate XLA fallback.
    x1 = jax.random.normal(key, (2, 8, 32), dtype=jnp.float32)
    y1 = jax.block_until_ready(module(x1))
    assert y1.shape == (2, 32, 8), y1.shape
    assert jnp.array_equal(y1, jnp.swapaxes(x1, 1, 2)), "mismatch (small fallback)"

    # 2) f32 Pallas path: non-power-of-two D handled as one full-extent 640-wide
    #    tile; batch folding packs all 3 batches into a single ~1.9 MiB block.
    k2 = jax.random.PRNGKey(1)
    x2 = jax.random.normal(k2, (3, 256, 640), dtype=jnp.float32)
    y2 = jax.block_until_ready(module(x2))
    assert y2.shape == (3, 640, 256), y2.shape
    assert jnp.array_equal(y2, jnp.swapaxes(x2, 1, 2)), "mismatch (f32 kernel)"

    # 3) bf16 Pallas path (packed dtype, tL=512 lane-dense output stores).
    k3 = jax.random.PRNGKey(2)
    x3 = jax.random.normal(k3, (2, 512, 640), dtype=jnp.bfloat16)
    y3 = jax.block_until_ready(module(x3))
    assert y3.shape == (2, 640, 512), y3.shape
    assert jnp.array_equal(y3, jnp.swapaxes(x3, 1, 2)), "mismatch (bf16 kernel)"

    # 4) f32 path with a multi-step grid over batch (tL=384, tD=1024).
    k4 = jax.random.PRNGKey(3)
    x4 = jax.random.normal(k4, (2, 384, 1024), dtype=jnp.float32)
    y4 = jax.block_until_ready(module(x4))
    assert y4.shape == (2, 1024, 384), y4.shape
    assert jnp.array_equal(y4, jnp.swapaxes(x4, 1, 2)), "mismatch (gridded f32)"

    print("KERNEL_OK")
</pallas_src>

<mosaic_0001>
module attributes {stable_mosaic.version = 11 : i64} {
  func.func @_transpose_kernel(%arg0: i32, %arg1: i32, %arg2: i32, %arg3: memref<3x256x640xf32, #tpu.memory_space<vmem>>, %arg4: memref<3x640x256xf32, #tpu.memory_space<vmem>>) attributes {dimension_semantics = [#tpu.dimension_semantics<parallel>, #tpu.dimension_semantics<parallel>, #tpu.dimension_semantics<parallel>], iteration_bounds = array<i64: 1, 1, 1>, scalar_prefetch = 0 : i64, scratch_operands = 0 : i64, tpu.core_type = #tpu.core_type<tc>, window_params = [{transform_indices = @transform_0, window_bounds = array<i64: 3, 256, 640>}, {transform_indices = @transform_1, window_bounds = array<i64: 3, 640, 256>}]} {
    %c0 = arith.constant 0 : index
    %c0_0 = arith.constant 0 : index
    %c0_1 = arith.constant 0 : index
    %0 = vector.load %arg3[%c0, %c0_0, %c0_1] : memref<3x256x640xf32, #tpu.memory_space<vmem>>, vector<3x256x640xf32>
    %1 = tpu.transpose %0, [0, 2, 1] : vector<3x256x640xf32> -> vector<3x640x256xf32>
    %c0_2 = arith.constant 0 : index
    %c0_3 = arith.constant 0 : index
    %c0_4 = arith.constant 0 : index
    %2 = vector.load %arg4[%c0_2, %c0_3, %c0_4] : memref<3x640x256xf32, #tpu.memory_space<vmem>>, vector<3x640x256xf32>
    tpu.vector_store %arg4[%c0_2, %c0_3, %c0_4], %1 {strides = array<i32>} : memref<3x640x256xf32, #tpu.memory_space<vmem>>, vector<3x640x256xf32>,
    return
  }
  func.func @transform_0(%arg0: i32, %arg1: i32, %arg2: i32) -> (i32, i32, i32) {
    %c0_i32 = arith.constant 0 : i32
    return %arg0, %arg1, %arg2 : i32, i32, i32
  }
  func.func @transform_1(%arg0: i32, %arg1: i32, %arg2: i32) -> (i32, i32, i32) {
    %c0_i32 = arith.constant 0 : i32
    return %arg0, %arg2, %arg1 : i32, i32, i32
  }
}

</mosaic_0001>

<bundles_post_ra>
// kernel: tpu_custom_call.1
= control target key start
LH: loop header
LB: loop body
LE: loop exit
PB: predicated region body
PF: predicated region fallthrough
CT: control target
= control target key end

     0   :  { %6 = vsyncpa [#allocation3], 0  ;;  %s2032_s0 = inlined_call_operand.hbm [shape: f32[3,256,640], index: 0, kind: input, shape index: {}]   ;;  %s2033_s1 = inlined_call_operand.hbm [shape: f32[3,640,256], index: 1, kind: output, shape index: {}]  }
   0x1   :  { %7 = vsyncpa [#allocation4], 0  ;;  %s2010_s6 = smov [#allocation2]  }
   0x2   :  { %s13_s7 = sshll.u32 %s2010_s6, 4  ;;  %s14_s7 = int_to_ptr.vmem [resolvable:$true] %s13_s7 }
   0x3   :  { %s1974_s8 = scalar_lea.vmem %s14_s7, 61440  ;;  %p1979_p1 = scmp.lt.s32.totalorder %s14_s7, %s14_s7 }
   0x4   :  { %p1975_p0 = scmp.ne.s32.totalorder %s14_s7, %s1974_s8  ;;  %p1980_p2 = scmp.lt.s32.totalorder %s1974_s8, %s1974_s8 }
   0x6   :  { %p1981_p3 = por %p1980_p2, %p1979_p1 }
   0x8   :  { %p1982_p4 = pnand %p1981_p3, %p1975_p0 }
   0xa   :  { %1985 = shalt.err (!%p1982_p4)
}
   0xb   :  { %s2011_s9 = smov 640   ;;  %s2012_s10 = smov 40  }
   0xc   :  { %19 = dma.hbm_to_vmem [thread:$0]  %s2032_s0, 61440, %s14_s7, [#allocation3], %s2011_s9, %s2011_s9, %s2012_s10  }
   0xd   :  { %2006 = dma.done.wait [#allocation3], 61440  }
   0xe   :  { %2007 = vsyncadd [#allocation3], 4294905856  ;;  %v24_v0 = vld [vmem:[#allocation2 + $0x8] sm:$0xff]  ;;  %v23_v1 = vld [vmem:[#allocation2] sm:$0xff]  ;;  %s2013_s0 = smov [#allocation5]  }
   0xf   :  { %535 = vxpose.xlu1.b32.start [1/16] %v24_v0, 128  ;;  %503 = vxpose.xlu0.b32.start [1/16] %v23_v1, 128  ;;  %v29_v2 = vld [vmem:[#allocation2 + $0x30] sm:$0xff]  ;;  %v28_v3 = vld [vmem:[#allocation2 + $0x28] sm:$0xff]  ;;  %v34_v4 = vld [vmem:[#allocation2 + $0x58] sm:$0xff]  ;;  %s1948_s13 = sshll.u32 %s2013_s0, 4  ;;  %s1949_s13 = int_to_ptr.vmem [resolvable:$true] %s1948_s13 }
  0x10   :  { %v33_v5 = vld [vmem:[#allocation2 + $0x50] sm:$0xff]  ;;  %v39_v6 = vld [vmem:[#allocation2 + $0x80] sm:$0xff]  ;;  %v38_v7 = vld [vmem:[#allocation2 + $0x78] sm:$0xff]  ;;  %s1986_s14 = scalar_lea.vmem %s1949_s13, 61440  ;;  %p1991_p6 = scmp.lt.s32.totalorder %s1949_s13, %s1949_s13 }
  0x11   :  { %v44_v8 = vld [vmem:[#allocation2 + $0xa8] sm:$0xff]  ;;  %v43_v9 = vld [vmem:[#allocation2 + $0xa0] sm:$0xff]  ;;  %v49_v10 = vld [vmem:[#allocation2 + $0xd0] sm:$0xff]  ;;  %p1987_p5 = scmp.ne.s32.totalorder %s1949_s13, %s1986_s14  ;;  %p1992_p7 = scmp.lt.s32.totalorder %s1986_s14, %s1986_s14 }
  0x12   :  { %v48_v11 = vld [vmem:[#allocation2 + $0xc8] sm:$0xff]  ;;  %v54_v12 = vld [vmem:[#allocation2 + $0xf8] sm:$0xff]  ;;  %v53_v13 = vld [vmem:[#allocation2 + $0xf0] sm:$0xff] }
  0x13   :  { %536 = vxpose.xlu1.b32.cont [2/16] %v29_v2, 128  ;;  %504 = vxpose.xlu0.b32.cont [2/16] %v28_v3, 128  ;;  %v59_v14 = vld [vmem:[#allocation2 + $0x120] sm:$0xff]  ;;  %v58_v15 = vld [vmem:[#allocation2 + $0x118] sm:$0xff]  ;;  %v64_v16 = vld [vmem:[#allocation2 + $0x148] sm:$0xff]  ;;  %p1993_p8 = por %p1992_p7, %p1991_p6 }
  0x14   :  { %v63_v17 = vld [vmem:[#allocation2 + $0x140] sm:$0xff]  ;;  %v69_v18 = vld [vmem:[#allocation2 + $0x170] sm:$0xff]  ;;  %v68_v19 = vld [vmem:[#allocation2 + $0x168] sm:$0xff] }
  0x15   :  { %v74_v20 = vld [vmem:[#allocation2 + $0x198] sm:$0xff]  ;;  %v73_v21 = vld [vmem:[#allocation2 + $0x190] sm:$0xff]  ;;  %v79_v22 = vld [vmem:[#allocation2 + $0x1c0] sm:$0xff]  ;;  %p1994_p9 = pnand %p1993_p8, %p1987_p5 }
  0x16   :  { %v78_v23 = vld [vmem:[#allocation2 + $0x1b8] sm:$0xff]  ;;  %v84_v24 = vld [vmem:[#allocation2 + $0x1e8] sm:$0xff]  ;;  %v83_v25 = vld [vmem:[#allocation2 + $0x1e0] sm:$0xff] }
  0x17   :  { %537 = vxpose.xlu1.b32.cont [3/16] %v34_v4, 128  ;;  %505 = vxpose.xlu0.b32.cont [3/16] %v33_v5, 128  ;;  %v89_v26 = vld [vmem:[#allocation2 + $0x210] sm:$0xff]  ;;  %v88_v27 = vld [vmem:[#allocation2 + $0x208] sm:$0xff]  ;;  %v94_v28 = vld [vmem:[#allocation2 + $0x238] sm:$0xff] }
  0x18   :  { %v93_v29 = vld [vmem:[#allocation2 + $0x230] sm:$0xff]  ;;  %v99_v30 = vld [vmem:[#allocation2 + $0x260] sm:$0xff]  ;;  %v98_v31 = vld [vmem:[#allocation2 + $0x258] sm:$0xff] }
  0x19   :  { %v26_v32 = vld [vmem:[#allocation2 + $0x18] sm:$0xff]  ;;  %v25_v33 = vld [vmem:[#allocation2 + $0x10] sm:$0xff]  ;;  %v31_v34 = vld [vmem:[#allocation2 + $0x40] sm:$0xff] }
  0x1a   :  { %v30_v35 = vld [vmem:[#allocation2 + $0x38] sm:$0xff]  ;;  %v36_v36 = vld [vmem:[#allocation2 + $0x68] sm:$0xff]  ;;  %v35_v37 = vld [vmem:[#allocation2 + $0x60] sm:$0xff] }
  0x1b   :  { %538 = vxpose.xlu1.b32.cont [4/16] %v39_v6, 128  ;;  %506 = vxpose.xlu0.b32.cont [4/16] %v38_v7, 128  ;;  %v41_v38 = vld [vmem:[#allocation2 + $0x90] sm:$0xff]  ;;  %v40_v39 = vld [vmem:[#allocation2 + $0x88] sm:$0xff]  ;;  %v46_v40 = vld [vmem:[#allocation2 + $0xb8] sm:$0xff] }
  0x1c   :  { %v45_v41 = vld [vmem:[#allocation2 + $0xb0] sm:$0xff]  ;;  %v51_v42 = vld [vmem:[#allocation2 + $0xe0] sm:$0xff]  ;;  %v50_v43 = vld [vmem:[#allocation2 + $0xd8] sm:$0xff] }
  0x1d   :  { %v56_v44 = vld [vmem:[#allocation2 + $0x108] sm:$0xff]  ;;  %v55_v45 = vld [vmem:[#allocation2 + $0x100] sm:$0xff]  ;;  %v61_v46 = vld [vmem:[#allocation2 + $0x130] sm:$0xff] }
  0x1e   :  { %v60_v47 = vld [vmem:[#allocation2 + $0x128] sm:$0xff]  ;;  %v66_v48 = vld [vmem:[#allocation2 + $0x158] sm:$0xff]  ;;  %v65_v49 = vld [vmem:[#allocation2 + $0x150] sm:$0xff] }
  0x1f   :  { %539 = vxpose.xlu1.b32.cont [5/16] %v44_v8, 128  ;;  %507 = vxpose.xlu0.b32.cont [5/16] %v43_v9, 128  ;;  %v71_v50 = vld [vmem:[#allocation2 + $0x180] sm:$0xff]  ;;  %v70_v51 = vld [vmem:[#allocation2 + $0x178] sm:$0xff]  ;;  %v76_v52 = vld [vmem:[#allocation2 + $0x1a8] sm:$0xff] }
  0x20   :  { %v75_v53 = vld [vmem:[#allocation2 + $0x1a0] sm:$0xff]  ;;  %v81_v54 = vld [vmem:[#allocation2 + $0x1d0] sm:$0xff]  ;;  %v80_v55 = vld [vmem:[#allocation2 + $0x1c8] sm:$0xff] }
  0x21   :  { %v86_v56 = vld [vmem:[#allocation2 + $0x1f8] sm:$0xff]  ;;  %v85_v57 = vld [vmem:[#allocation2 + $0x1f0] sm:$0xff]  ;;  %v91_v58 = vld [vmem:[#allocation2 + $0x220] sm:$0xff] }
  0x22   :  { %v90_v59 = vld [vmem:[#allocation2 + $0x218] sm:$0xff]  ;;  %v96_v60 = vld [vmem:[#allocation2 + $0x248] sm:$0xff]  ;;  %v95_v61 = vld [vmem:[#allocation2 + $0x240] sm:$0xff] }
  0x23   :  { %540 = vxpose.xlu1.b32.cont [6/16] %v49_v10, 128  ;;  %508 = vxpose.xlu0.b32.cont [6/16] %v48_v11, 128  ;;  %v101_v62 = vld [vmem:[#allocation2 + $0x270] sm:$0xff]  ;;  %v100_v63 = vld [vmem:[#allocation2 + $0x268] sm:$0xff]  ;;  %v103_v2 = vld [vmem:[#allocation2 + $0x280] sm:$0xff] }
  0x24   :  { %v27_v3 = vld [vmem:[#allocation2 + $0x20] sm:$0xff]  ;;  %v108_v6 = vld [vmem:[#allocation2 + $0x2a8] sm:$0xff]  ;;  %v113_v10 = vld [vmem:[#allocation2 + $0x2d0] sm:$0xff] }
  0x25   :  { %v32_v7 = vld [vmem:[#allocation2 + $0x48] sm:$0xff]  ;;  %v37_v11 = vld [vmem:[#allocation2 + $0x70] sm:$0xff] }
  0x27   :  { %541 = vxpose.xlu1.b32.cont [7/16] %v54_v12, 128  ;;  %509 = vxpose.xlu0.b32.cont [7/16] %v53_v13, 128 }
  0x2b   :  { %542 = vxpose.xlu1.b32.cont [8/16] %v59_v14, 128  ;;  %510 = vxpose.xlu0.b32.cont [8/16] %v58_v15, 128  ;;  %v118_v14 = vld [vmem:[#allocation2 + $0x2f8] sm:$0xff] }
  0x2c   :  { %v42_v15 = vld [vmem:[#allocation2 + $0x98] sm:$0xff] }
  0x2f   :  { %543 = vxpose.xlu1.b32.cont [9/16] %v64_v16, 128  ;;  %511 = vxpose.xlu0.b32.cont [9/16] %v63_v17, 128 }
  0x33   :  { %544 = vxpose.xlu1.b32.cont [10/16] %v69_v18, 128  ;;  %512 = vxpose.xlu0.b32.cont [10/16] %v68_v19, 128  ;;  %v123_v18 = vld [vmem:[#allocation2 + $0x320] sm:$0xff] }
  0x34   :  { %v47_v19 = vld [vmem:[#allocation2 + $0xc0] sm:$0xff] }
  0x37   :  { %545 = vxpose.xlu1.b32.cont [11/16] %v74_v20, 128  ;;  %513 = vxpose.xlu0.b32.cont [11/16] %v73_v21, 128 }
  0x3b   :  { %546 = vxpose.xlu1.b32.cont [12/16] %v79_v22, 128  ;;  %514 = vxpose.xlu0.b32.cont [12/16] %v78_v23, 128  ;;  %v128_v22 = vld [vmem:[#allocation2 + $0x348] sm:$0xff] }
  0x3c   :  { %v52_v23 = vld [vmem:[#allocation2 + $0xe8] sm:$0xff] }
  0x3f   :  { %547 = vxpose.xlu1.b32.cont [13/16] %v84_v24, 128  ;;  %515 = vxpose.xlu0.b32.cont [13/16] %v83_v25, 128 }
  0x43   :  { %548 = vxpose.xlu1.b32.cont [14/16] %v89_v26, 128  ;;  %516 = vxpose.xlu0.b32.cont [14/16] %v88_v27, 128  ;;  %v133_v26 = vld [vmem:[#allocation2 + $0x370] sm:$0xff] }
  0x44   :  { %v57_v27 = vld [vmem:[#allocation2 + $0x110] sm:$0xff] }
  0x47   :  { %549 = vxpose.xlu1.b32.cont [15/16] %v94_v28, 128  ;;  %517 = vxpose.xlu0.b32.cont [15/16] %v93_v29, 128 }
  0x4b   :  { %550 = vxpose.xlu1.b32.end [16/16] %v99_v30, 128  ;;  %518 = vxpose.xlu0.b32.end [16/16] %v98_v31, 128  ;;  %v138_v30 = vld [vmem:[#allocation2 + $0x398] sm:$0xff] }
  0x4c   :  { %v62_v31 = vld [vmem:[#allocation2 + $0x138] sm:$0xff] }
  0x4f   :  { %599 = vxpose.xlu1.b32.start [1/16] %v26_v32, 128  ;;  %567 = vxpose.xlu0.b32.start [1/16] %v25_v33, 128 }
  0x53   :  { %600 = vxpose.xlu1.b32.cont [2/16] %v31_v34, 128  ;;  %568 = vxpose.xlu0.b32.cont [2/16] %v30_v35, 128  ;;  %v143_v34 = vld [vmem:[#allocation2 + $0x3c0] sm:$0xff] }
  0x54   :  { %v67_v35 = vld [vmem:[#allocation2 + $0x160] sm:$0xff] }
  0x57   :  { %601 = vxpose.xlu1.b32.cont [3/16] %v36_v36, 128  ;;  %569 = vxpose.xlu0.b32.cont [3/16] %v35_v37, 128 }
  0x5b   :  { %602 = vxpose.xlu1.b32.cont [4/16] %v41_v38, 128  ;;  %570 = vxpose.xlu0.b32.cont [4/16] %v40_v39, 128  ;;  %v148_v38 = vld [vmem:[#allocation2 + $0x3e8] sm:$0xff] }
  0x5c   :  { %v72_v39 = vld [vmem:[#allocation2 + $0x188] sm:$0xff] }
  0x5f   :  { %603 = vxpose.xlu1.b32.cont [5/16] %v46_v40, 128  ;;  %571 = vxpose.xlu0.b32.cont [5/16] %v45_v41, 128 }
  0x63   :  { %604 = vxpose.xlu1.b32.cont [6/16] %v51_v42, 128  ;;  %572 = vxpose.xlu0.b32.cont [6/16] %v50_v43, 128  ;;  %v153_v42 = vld [vmem:[#allocation2 + $0x410] sm:$0xff] }
  0x64   :  { %v77_v43 = vld [vmem:[#allocation2 + $0x1b0] sm:$0xff] }
  0x67   :  { %605 = vxpose.xlu1.b32.cont [7/16] %v56_v44, 128  ;;  %573 = vxpose.xlu0.b32.cont [7/16] %v55_v45, 128 }
  0x6b   :  { %606 = vxpose.xlu1.b32.cont [8/16] %v61_v46, 128  ;;  %574 = vxpose.xlu0.b32.cont [8/16] %v60_v47, 128  ;;  %v158_v46 = vld [vmem:[#allocation2 + $0x438] sm:$0xff] }
  0x6c   :  { %v82_v47 = vld [vmem:[#allocation2 + $0x1d8] sm:$0xff] }
  0x6f   :  { %607 = vxpose.xlu1.b32.cont [9/16] %v66_v48, 128  ;;  %575 = vxpose.xlu0.b32.cont [9/16] %v65_v49, 128 }
  0x73   :  { %608 = vxpose.xlu1.b32.cont [10/16] %v71_v50, 128  ;;  %576 = vxpose.xlu0.b32.cont [10/16] %v70_v51, 128  ;;  %v163_v50 = vld [vmem:[#allocation2 + $0x460] sm:$0xff] }
  0x74   :  { %v87_v51 = vld [vmem:[#allocation2 + $0x200] sm:$0xff] }
  0x77   :  { %609 = vxpose.xlu1.b32.cont [11/16] %v76_v52, 128  ;;  %577 = vxpose.xlu0.b32.cont [11/16] %v75_v53, 128 }
  0x7b   :  { %610 = vxpose.xlu1.b32.cont [12/16] %v81_v54, 128  ;;  %578 = vxpose.xlu0.b32.cont [12/16] %v80_v55, 128  ;;  %v168_v54 = vld [vmem:[#allocation2 + $0x488] sm:$0xff] }
  0x7c   :  { %v92_v55 = vld [vmem:[#allocation2 + $0x228] sm:$0xff] }
  0x7f   :  { %611 = vxpose.xlu1.b32.cont [13/16] %v86_v56, 128  ;;  %579 = vxpose.xlu0.b32.cont [13/16] %v85_v57, 128 }
  0x83   :  { %612 = vxpose.xlu1.b32.cont [14/16] %v91_v58, 128  ;;  %580 = vxpose.xlu0.b32.cont [14/16] %v90_v59, 128  ;;  %v173_v58 = vld [vmem:[#allocation2 + $0x4b0] sm:$0xff] }
  0x84   :  { %v97_v59 = vld [vmem:[#allocation2 + $0x250] sm:$0xff] }
  0x87   :  { %613 = vxpose.xlu1.b32.cont [15/16] %v96_v60, 128  ;;  %581 = vxpose.xlu0.b32.cont [15/16] %v95_v61, 128 }
  0x8b   :  { %614 = vxpose.xlu1.b32.end [16/16] %v101_v62, 128  ;;  %v551_v0 = vpop.trf.xlu1  ;;  %582 = vxpose.xlu0.b32.end [16/16] %v100_v63, 128  ;;  %v519_v1 = vpop.trf.xlu0  ;;  %v178_v62 = vld [vmem:[#allocation2 + $0x4d8] sm:$0xff] }
  0x8c   :  { %1495 = vst [vmem:[#allocation5 + $0x100] sm:$0xff] %v551_v0  ;;  %1463 = vst [vmem:[#allocation5] sm:$0xff] %v519_v1  ;;  %v102_v63 = vld [vmem:[#allocation2 + $0x278] sm:$0xff] }
  0x8f   :  { %663 = vxpose.xlu1.b32.start [1/16] %v103_v2, 128  ;;  %v552_v4 = vpop.trf.xlu1  ;;  %631 = vxpose.xlu0.b32.start [1/16] %v27_v3, 128  ;;  %v520_v5 = vpop.trf.xlu0  ;;  %v105_v2 = vld [vmem:[#allocation2 + $0x290] sm:$0xff]  ;;  %v104_v3 = vld [vmem:[#allocation2 + $0x288] sm:$0xff] }
  0x90   :  { %1497 = vst [vmem:[#allocation5 + $0x110] sm:$0xff] %v552_v4  ;;  %1465 = vst [vmem:[#allocation5 + $0x10] sm:$0xff] %v520_v5 }
  0x93   :  { %664 = vxpose.xlu1.b32.cont [2/16] %v108_v6, 128  ;;  %v553_v8 = vpop.trf.xlu1  ;;  %632 = vxpose.xlu0.b32.cont [2/16] %v32_v7, 128  ;;  %v521_v9 = vpop.trf.xlu0  ;;  %v110_v6 = vld [vmem:[#allocation2 + $0x2b8] sm:$0xff]  ;;  %v109_v7 = vld [vmem:[#allocation2 + $0x2b0] sm:$0xff] }
  0x94   :  { %1499 = vst [vmem:[#allocation5 + $0x120] sm:$0xff] %v553_v8  ;;  %1467 = vst [vmem:[#allocation5 + $0x20] sm:$0xff] %v521_v9 }
  0x97   :  { %665 = vxpose.xlu1.b32.cont [3/16] %v113_v10, 128  ;;  %v554_v12 = vpop.trf.xlu1  ;;  %633 = vxpose.xlu0.b32.cont [3/16] %v37_v11, 128  ;;  %v522_v13 = vpop.trf.xlu0  ;;  %v115_v10 = vld [vmem:[#allocation2 + $0x2e0] sm:$0xff]  ;;  %v114_v11 = vld [vmem:[#allocation2 + $0x2d8] sm:$0xff] }
  0x98   :  { %1501 = vst [vmem:[#allocation5 + $0x130] sm:$0xff] %v554_v12  ;;  %1469 = vst [vmem:[#allocation5 + $0x30] sm:$0xff] %v522_v13 }
  0x9b   :  { %666 = vxpose.xlu1.b32.cont [4/16] %v118_v14, 128  ;;  %v555_v16 = vpop.trf.xlu1  ;;  %634 = vxpose.xlu0.b32.cont [4/16] %v42_v15, 128  ;;  %v523_v17 = vpop.trf.xlu0  ;;  %v120_v14 = vld [vmem:[#allocation2 + $0x308] sm:$0xff]  ;;  %v119_v15 = vld [vmem:[#allocation2 + $0x300] sm:$0xff] }
  0x9c   :  { %1503 = vst [vmem:[#allocation5 + $0x140] sm:$0xff] %v555_v16  ;;  %1471 = vst [vmem:[#allocation5 + $0x40] sm:$0xff] %v523_v17 }
  0x9f   :  { %667 = vxpose.xlu1.b32.cont [5/16] %v123_v18, 128  ;;  %v556_v20 = vpop.trf.xlu1  ;;  %635 = vxpose.xlu0.b32.cont [5/16] %v47_v19, 128  ;;  %v524_v21 = vpop.trf.xlu0  ;;  %v125_v18 = vld [vmem:[#allocation2 + $0x330] sm:$0xff]  ;;  %v124_v19 = vld [vmem:[#allocation2 + $0x328] sm:$0xff] }
  0xa0   :  { %1505 = vst [vmem:[#allocation5 + $0x150] sm:$0xff] %v556_v20  ;;  %1473 = vst [vmem:[#allocation5 + $0x50] sm:$0xff] %v524_v21 }
  0xa3   :  { %668 = vxpose.xlu1.b32.cont [6/16] %v128_v22, 128  ;;  %v557_v24 = vpop.trf.xlu1  ;;  %636 = vxpose.xlu0.b32.cont [6/16] %v52_v23, 128  ;;  %v525_v25 = vpop.trf.xlu0  ;;  %v130_v22 = vld [vmem:[#allocation2 + $0x358] sm:$0xff]  ;;  %v129_v23 = vld [vmem:[#allocation2 + $0x350] sm:$0xff] }
  0xa4   :  { %1507 = vst [vmem:[#allocation5 + $0x160] sm:$0xff] %v557_v24  ;;  %1475 = vst [vmem:[#allocation5 + $0x60] sm:$0xff] %v525_v25 }
  0xa7   :  { %669 = vxpose.xlu1.b32.cont [7/16] %v133_v26, 128  ;;  %v558_v28 = vpop.trf.xlu1  ;;  %637 = vxpose.xlu0.b32.cont [7/16] %v57_v27, 128  ;;  %v526_v29 = vpop.trf.xlu0  ;;  %v135_v26 = vld [vmem:[#allocation2 + $0x380] sm:$0xff]  ;;  %v134_v27 = vld [vmem:[#allocation2 + $0x378] sm:$0xff] }
  0xa8   :  { %1509 = vst [vmem:[#allocation5 + $0x170] sm:$0xff] %v558_v28  ;;  %1477 = vst [vmem:[#allocation5 + $0x70] sm:$0xff] %v526_v29 }
  0xab   :  { %670 = vxpose.xlu1.b32.cont [8/16] %v138_v30, 128  ;;  %v559_v32 = vpop.trf.xlu1  ;;  %638 = vxpose.xlu0.b32.cont [8/16] %v62_v31, 128  ;;  %v527_v33 = vpop.trf.xlu0  ;;  %v140_v30 = vld [vmem:[#allocation2 + $0x3a8] sm:$0xff]  ;;  %v139_v31 = vld [vmem:[#allocation2 + $0x3a0] sm:$0xff] }
  0xac   :  { %1511 = vst [vmem:[#allocation5 + $0x180] sm:$0xff] %v559_v32  ;;  %1479 = vst [vmem:[#allocation5 + $0x80] sm:$0xff] %v527_v33 }
  0xaf   :  { %671 = vxpose.xlu1.b32.cont [9/16] %v143_v34, 128  ;;  %v560_v36 = vpop.trf.xlu1  ;;  %639 = vxpose.xlu0.b32.cont [9/16] %v67_v35, 128  ;;  %v528_v37 = vpop.trf.xlu0  ;;  %v145_v34 = vld [vmem:[#allocation2 + $0x3d0] sm:$0xff]  ;;  %v144_v35 = vld [vmem:[#allocation2 + $0x3c8] sm:$0xff] }
  0xb0   :  { %1513 = vst [vmem:[#allocation5 + $0x190] sm:$0xff] %v560_v36  ;;  %1481 = vst [vmem:[#allocation5 + $0x90] sm:$0xff] %v528_v37 }
  0xb3   :  { %672 = vxpose.xlu1.b32.cont [10/16] %v148_v38, 128  ;;  %v561_v40 = vpop.trf.xlu1  ;;  %640 = vxpose.xlu0.b32.cont [10/16] %v72_v39, 128  ;;  %v529_v41 = vpop.trf.xlu0  ;;  %v150_v38 = vld [vmem:[#allocation2 + $0x3f8] sm:$0xff]  ;;  %v149_v39 = vld [vmem:[#allocation2 + $0x3f0] sm:$0xff] }
  0xb4   :  { %1515 = vst [vmem:[#allocation5 + $0x1a0] sm:$0xff] %v561_v40  ;;  %1483 = vst [vmem:[#allocation5 + $0xa0] sm:$0xff] %v529_v41 }
  0xb7   :  { %673 = vxpose.xlu1.b32.cont [11/16] %v153_v42, 128  ;;  %v562_v44 = vpop.trf.xlu1  ;;  %641 = vxpose.xlu0.b32.cont [11/16] %v77_v43, 128  ;;  %v530_v45 = vpop.trf.xlu0  ;;  %v155_v42 = vld [vmem:[#allocation2 + $0x420] sm:$0xff]  ;;  %v154_v43 = vld [vmem:[#allocation2 + $0x418] sm:$0xff] }
  0xb8   :  { %1517 = vst [vmem:[#allocation5 + $0x1b0] sm:$0xff] %v562_v44  ;;  %1485 = vst [vmem:[#allocation5 + $0xb0] sm:$0xff] %v530_v45 }
  0xbb   :  { %674 = vxpose.xlu1.b32.cont [12/16] %v158_v46, 128  ;;  %v563_v48 = vpop.trf.xlu1  ;;  %642 = vxpose.xlu0.b32.cont [12/16] %v82_v47, 128  ;;  %v531_v49 = vpop.trf.xlu0  ;;  %v160_v46 = vld [vmem:[#allocation2 + $0x448] sm:$0xff]  ;;  %v159_v47 = vld [vmem:[#allocation2 + $0x440] sm:$0xff] }
  0xbc   :  { %1519 = vst [vmem:[#allocation5 + $0x1c0] sm:$0xff] %v563_v48  ;;  %1487 = vst [vmem:[#allocation5 + $0xc0] sm:$0xff] %v531_v49 }
  0xbf   :  { %675 = vxpose.xlu1.b32.cont [13/16] %v163_v50, 128  ;;  %v564_v52 = vpop.trf.xlu1  ;;  %643 = vxpose.xlu0.b32.cont [13/16] %v87_v51, 128  ;;  %v532_v53 = vpop.trf.xlu0  ;;  %v165_v50 = vld [vmem:[#allocation2 + $0x470] sm:$0xff]  ;;  %v164_v51 = vld [vmem:[#allocation2 + $0x468] sm:$0xff] }
  0xc0   :  { %1521 = vst [vmem:[#allocation5 + $0x1d0] sm:$0xff] %v564_v52  ;;  %1489 = vst [vmem:[#allocation5 + $0xd0] sm:$0xff] %v532_v53 }
  0xc3   :  { %676 = vxpose.xlu1.b32.cont [14/16] %v168_v54, 128  ;;  %v565_v56 = vpop.trf.xlu1  ;;  %644 = vxpose.xlu0.b32.cont [14/16] %v92_v55, 128  ;;  %v533_v57 = vpop.trf.xlu0  ;;  %v170_v54 = vld [vmem:[#allocation2 + $0x498] sm:$0xff]  ;;  %v169_v55 = vld [vmem:[#allocation2 + $0x490] sm:$0xff] }
  0xc4   :  { %1523 = vst [vmem:[#allocation5 + $0x1e0] sm:$0xff] %v565_v56  ;;  %1491 = vst [vmem:[#allocation5 + $0xe0] sm:$0xff] %v533_v57 }
  0xc7   :  { %677 = vxpose.xlu1.b32.cont [15/16] %v173_v58, 128  ;;  %v566_v60 = vpop.trf.xlu1  ;;  %645 = vxpose.xlu0.b32.cont [15/16] %v97_v59, 128  ;;  %v534_v61 = vpop.trf.xlu0  ;;  %v175_v58 = vld [vmem:[#allocation2 + $0x4c0] sm:$0xff]  ;;  %v174_v59 = vld [vmem:[#allocation2 + $0x4b8] sm:$0xff] }
  0xc8   :  { %1525 = vst [vmem:[#allocation5 + $0x1f0] sm:$0xff] %v566_v60  ;;  %1493 = vst [vmem:[#allocation5 + $0xf0] sm:$0xff] %v534_v61 }
  0xcb   :  { %678 = vxpose.xlu1.b32.end [16/16] %v178_v62, 128  ;;  %v615_v0 = vpop.trf.xlu1  ;;  %646 = vxpose.xlu0.b32.end [16/16] %v102_v63, 128  ;;  %v583_v1 = vpop.trf.xlu0  ;;  %v180_v62 = vld [vmem:[#allocation2 + $0x4e8] sm:$0xff]  ;;  %v179_v63 = vld [vmem:[#allocation2 + $0x4e0] sm:$0xff] }
  0xcc   :  { %1559 = vst [vmem:[#allocation5 + $0x300] sm:$0xff] %v615_v0  ;;  %1527 = vst [vmem:[#allocation5 + $0x200] sm:$0xff] %v583_v1 }
  0xcf   :  { %727 = vxpose.xlu1.b32.start [1/16] %v105_v2, 128  ;;  %v616_v4 = vpop.trf.xlu1  ;;  %695 = vxpose.xlu0.b32.start [1/16] %v104_v3, 128  ;;  %v584_v5 = vpop.trf.xlu0  ;;  %v107_v2 = vld [vmem:[#allocation2 + $0x2a0] sm:$0xff]  ;;  %v106_v3 = vld [vmem:[#allocation2 + $0x298] sm:$0xff] }
  0xd0   :  { %1561 = vst [vmem:[#allocation5 + $0x310] sm:$0xff] %v616_v4  ;;  %1529 = vst [vmem:[#allocation5 + $0x210] sm:$0xff] %v584_v5 }
  0xd3   :  { %728 = vxpose.xlu1.b32.cont [2/16] %v110_v6, 128  ;;  %v617_v8 = vpop.trf.xlu1  ;;  %696 = vxpose.xlu0.b32.cont [2/16] %v109_v7, 128  ;;  %v585_v9 = vpop.trf.xlu0  ;;  %v112_v6 = vld [vmem:[#allocation2 + $0x2c8] sm:$0xff]  ;;  %v111_v7 = vld [vmem:[#allocation2 + $0x2c0] sm:$0xff] }
  0xd4   :  { %1563 = vst [vmem:[#allocation5 + $0x320] sm:$0xff] %v617_v8  ;;  %1531 = vst [vmem:[#allocation5 + $0x220] sm:$0xff] %v585_v9 }
  0xd7   :  { %729 = vxpose.xlu1.b32.cont [3/16] %v115_v10, 128  ;;  %v618_v12 = vpop.trf.xlu1  ;;  %697 = vxpose.xlu0.b32.cont [3/16] %v114_v11, 128  ;;  %v586_v13 = vpop.trf.xlu0  ;;  %v117_v10 = vld [vmem:[#allocation2 + $0x2f0] sm:$0xff]  ;;  %v116_v11 = vld [vmem:[#allocation2 + $0x2e8] sm:$0xff] }
  0xd8   :  { %1565 = vst [vmem:[#allocation5 + $0x330] sm:$0xff] %v618_v12  ;;  %1533 = vst [vmem:[#allocation5 + $0x230] sm:$0xff] %v586_v13 }
  0xdb   :  { %730 = vxpose.xlu1.b32.cont [4/16] %v120_v14, 128  ;;  %v619_v16 = vpop.trf.xlu1  ;;  %698 = vxpose.xlu0.b32.cont [4/16] %v119_v15, 128  ;;  %v587_v17 = vpop.trf.xlu0  ;;  %v122_v14 = vld [vmem:[#allocation2 + $0x318] sm:$0xff]  ;;  %v121_v15 = vld [vmem:[#allocation2 + $0x310] sm:$0xff] }
  0xdc   :  { %1567 = vst [vmem:[#allocation5 + $0x340] sm:$0xff] %v619_v16  ;;  %1535 = vst [vmem:[#allocation5 + $0x240] sm:$0xff] %v587_v17 }
  0xdf   :  { %731 = vxpose.xlu1.b32.cont [5/16] %v125_v18, 128  ;;  %v620_v20 = vpop.trf.xlu1  ;;  %699 = vxpose.xlu0.b32.cont [5/16] %v124_v19, 128  ;;  %v588_v21 = vpop.trf.xlu0  ;;  %v127_v18 = vld [vmem:[#allocation2 + $0x340] sm:$0xff]  ;;  %v126_v19 = vld [vmem:[#allocation2 + $0x338] sm:$0xff] }
  0xe0   :  { %1569 = vst [vmem:[#allocation5 + $0x350] sm:$0xff] %v620_v20  ;;  %1537 = vst [vmem:[#allocation5 + $0x250] sm:$0xff] %v588_v21 }
  0xe3   :  { %732 = vxpose.xlu1.b32.cont [6/16] %v130_v22, 128  ;;  %v621_v24 = vpop.trf.xlu1  ;;  %700 = vxpose.xlu0.b32.cont [6/16] %v129_v23, 128  ;;  %v589_v25 = vpop.trf.xlu0  ;;  %v132_v22 = vld [vmem:[#allocation2 + $0x368] sm:$0xff]  ;;  %v131_v23 = vld [vmem:[#allocation2 + $0x360] sm:$0xff] }
  0xe4   :  { %1571 = vst [vmem:[#allocation5 + $0x360] sm:$0xff] %v621_v24  ;;  %1539 = vst [vmem:[#allocation5 + $0x260] sm:$0xff] %v589_v25 }
  0xe7   :  { %733 = vxpose.xlu1.b32.cont [7/16] %v135_v26, 128  ;;  %v622_v28 = vpop.trf.xlu1  ;;  %701 = vxpose.xlu0.b32.cont [7/16] %v134_v27, 128  ;;  %v590_v29 = vpop.trf.xlu0  ;;  %v137_v26 = vld [vmem:[#allocation2 + $0x390] sm:$0xff]  ;;  %v136_v27 = vld [vmem:[#allocation2 + $0x388] sm:$0xff] }
  0xe8   :  { %1573 = vst [vmem:[#allocation5 + $0x370] sm:$0xff] %v622_v28  ;;  %1541 = vst [vmem:[#allocation5 + $0x270] sm:$0xff] %v590_v29 }
  0xeb   :  { %734 = vxpose.xlu1.b32.cont [8/16] %v140_v30, 128  ;;  %v623_v32 = vpop.trf.xlu1  ;;  %702 = vxpose.xlu0.b32.cont [8/16] %v139_v31, 128  ;;  %v591_v33 = vpop.trf.xlu0  ;;  %v142_v30 = vld [vmem:[#allocation2 + $0x3b8] sm:$0xff]  ;;  %v141_v31 = vld [vmem:[#allocation2 + $0x3b0] sm:$0xff] }
  0xec   :  { %1575 = vst [vmem:[#allocation5 + $0x380] sm:$0xff] %v623_v32  ;;  %1543 = vst [vmem:[#allocation5 + $0x280] sm:$0xff] %v591_v33 }
  0xef   :  { %735 = vxpose.xlu1.b32.cont [9/16] %v145_v34, 128  ;;  %v624_v36 = vpop.trf.xlu1  ;;  %703 = vxpose.xlu0.b32.cont [9/16] %v144_v35, 128  ;;  %v592_v37 = vpop.trf.xlu0  ;;  %v147_v34 = vld [vmem:[#allocation2 + $0x3e0] sm:$0xff]  ;;  %v146_v35 = vld [vmem:[#allocation2 + $0x3d8] sm:$0xff] }
  0xf0   :  { %1577 = vst [vmem:[#allocation5 + $0x390] sm:$0xff] %v624_v36  ;;  %1545 = vst [vmem:[#allocation5 + $0x290] sm:$0xff] %v592_v37 }
  0xf3   :  { %736 = vxpose.xlu1.b32.cont [10/16] %v150_v38, 128  ;;  %v625_v40 = vpop.trf.xlu1  ;;  %704 = vxpose.xlu0.b32.cont [10/16] %v149_v39, 128  ;;  %v593_v41 = vpop.trf.xlu0  ;;  %v152_v38 = vld [vmem:[#allocation2 + $0x408] sm:$0xff]  ;;  %v151_v39 = vld [vmem:[#allocation2 + $0x400] sm:$0xff] }
  0xf4   :  { %1579 = vst [vmem:[#allocation5 + $0x3a0] sm:$0xff] %v625_v40  ;;  %1547 = vst [vmem:[#allocation5 + $0x2a0] sm:$0xff] %v593_v41 }
  0xf7   :  { %737 = vxpose.xlu1.b32.cont [11/16] %v155_v42, 128  ;;  %v626_v44 = vpop.trf.xlu1  ;;  %705 = vxpose.xlu0.b32.cont [11/16] %v154_v43, 128  ;;  %v594_v45 = vpop.trf.xlu0  ;;  %v157_v42 = vld [vmem:[#allocation2 + $0x430] sm:$0xff]  ;;  %v156_v43 = vld [vmem:[#allocation2 + $0x428] sm:$0xff] }
  0xf8   :  { %1581 = vst [vmem:[#allocation5 + $0x3b0] sm:$0xff] %v626_v44  ;;  %1549 = vst [vmem:[#allocation5 + $0x2b0] sm:$0xff] %v594_v45 }
  0xfb   :  { %738 = vxpose.xlu1.b32.cont [12/16] %v160_v46, 128  ;;  %v627_v48 = vpop.trf.xlu1  ;;  %706 = vxpose.xlu0.b32.cont [12/16] %v159_v47, 128  ;;  %v595_v49 = vpop.trf.xlu0  ;;  %v162_v46 = vld [vmem:[#allocation2 + $0x458] sm:$0xff]  ;;  %v161_v47 = vld [vmem:[#allocation2 + $0x450] sm:$0xff] }
  0xfc   :  { %1583 = vst [vmem:[#allocation5 + $0x3c0] sm:$0xff] %v627_v48  ;;  %1551 = vst [vmem:[#allocation5 + $0x2c0] sm:$0xff] %v595_v49 }
  0xff   :  { %739 = vxpose.xlu1.b32.cont [13/16] %v165_v50, 128  ;;  %v628_v52 = vpop.trf.xlu1  ;;  %707 = vxpose.xlu0.b32.cont [13/16] %v164_v51, 128  ;;  %v596_v53 = vpop.trf.xlu0  ;;  %v167_v50 = vld [vmem:[#allocation2 + $0x480] sm:$0xff]  ;;  %v166_v51 = vld [vmem:[#allocation2 + $0x478] sm:$0xff] }
 0x100   :  { %1585 = vst [vmem:[#allocation5 + $0x3d0] sm:$0xff] %v628_v52  ;;  %1553 = vst [vmem:[#allocation5 + $0x2d0] sm:$0xff] %v596_v53 }
 0x103   :  { %740 = vxpose.xlu1.b32.cont [14/16] %v170_v54, 128  ;;  %v629_v56 = vpop.trf.xlu1  ;;  %708 = vxpose.xlu0.b32.cont [14/16] %v169_v55, 128  ;;  %v597_v57 = vpop.trf.xlu0  ;;  %v172_v54 = vld [vmem:[#allocation2 + $0x4a8] sm:$0xff]  ;;  %v171_v55 = vld [vmem:[#allocation2 + $0x4a0] sm:$0xff] }
 0x104   :  { %1587 = vst [vmem:[#allocation5 + $0x3e0] sm:$0xff] %v629_v56  ;;  %1555 = vst [vmem:[#allocation5 + $0x2e0] sm:$0xff] %v597_v57 }
 0x107   :  { %741 = vxpose.xlu1.b32.cont [15/16] %v175_v58, 128  ;;  %v630_v60 = vpop.trf.xlu1  ;;  %709 = vxpose.xlu0.b32.cont [15/16] %v174_v59, 128  ;;  %v598_v61 = vpop.trf.xlu0  ;;  %v177_v58 = vld [vmem:[#allocation2 + $0x4d0] sm:$0xff]  ;;  %v176_v59 = vld [vmem:[#allocation2 + $0x4c8] sm:$0xff] }
 0x108   :  { %1589 = vst [vmem:[#allocation5 + $0x3f0] sm:$0xff] %v630_v60  ;;  %1557 = vst [vmem:[#allocation5 + $0x2f0] sm:$0xff] %v598_v61 }
 0x10b   :  { %742 = vxpose.xlu1.b32.end [16/16] %v180_v62, 128  ;;  %v679_v0 = vpop.trf.xlu1  ;;  %710 = vxpose.xlu0.b32.end [16/16] %v179_v63, 128  ;;  %v647_v1 = vpop.trf.xlu0  ;;  %v182_v62 = vld [vmem:[#allocation2 + $0x4f8] sm:$0xff]  ;;  %v181_v63 = vld [vmem:[#allocation2 + $0x4f0] sm:$0xff] }
 0x10c   :  { %1464 = vst [vmem:[#allocation5 + $0x8] sm:$0xff] %v679_v0  ;;  %1591 = vst [vmem:[#allocation5 + $0x400] sm:$0xff] %v647_v1 }
 0x10f   :  { %791 = vxpose.xlu1.b32.start [1/16] %v107_v2, 128  ;;  %v680_v4 = vpop.trf.xlu1  ;;  %759 = vxpose.xlu0.b32.start [1/16] %v106_v3, 128  ;;  %v648_v5 = vpop.trf.xlu0  ;;  %v184_v2 = vld [vmem:[#allocation2 + $0x508] sm:$0xff]  ;;  %v183_v3 = vld [vmem:[#allocation2 + $0x500] sm:$0xff] }
 0x110   :  { %1466 = vst [vmem:[#allocation5 + $0x18] sm:$0xff] %v680_v4  ;;  %1593 = vst [vmem:[#allocation5 + $0x410] sm:$0xff] %v648_v5 }
 0x113   :  { %792 = vxpose.xlu1.b32.cont [2/16] %v112_v6, 128  ;;  %v681_v8 = vpop.trf.xlu1  ;;  %760 = vxpose.xlu0.b32.cont [2/16] %v111_v7, 128  ;;  %v649_v9 = vpop.trf.xlu0  ;;  %v189_v6 = vld [vmem:[#allocation2 + $0x530] sm:$0xff]  ;;  %v188_v7 = vld [vmem:[#allocation2 + $0x528] sm:$0xff] }
 0x114   :  { %1468 = vst [vmem:[#allocation5 + $0x28] sm:$0xff] %v681_v8  ;;  %1595 = vst [vmem:[#allocation5 + $0x420] sm:$0xff] %v649_v9 }
 0x117   :  { %793 = vxpose.xlu1.b32.cont [3/16] %v117_v10, 128  ;;  %v682_v12 = vpop.trf.xlu1  ;;  %761 = vxpose.xlu0.b32.cont [3/16] %v116_v11, 128  ;;  %v650_v13 = vpop.trf.xlu0  ;;  %v194_v10 = vld [vmem:[#allocation2 + $0x558] sm:$0xff]  ;;  %v193_v11 = vld [vmem:[#allocation2 + $0x550] sm:$0xff] }
 0x118   :  { %1470 = vst [vmem:[#allocation5 + $0x38] sm:$0xff] %v682_v12  ;;  %1597 = vst [vmem:[#allocation5 + $0x430] sm:$0xff] %v650_v13 }
 0x11b   :  { %794 = vxpose.xlu1.b32.cont [4/16] %v122_v14, 128  ;;  %v683_v16 = vpop.trf.xlu1  ;;  %762 = vxpose.xlu0.b32.cont [4/16] %v121_v15, 128  ;;  %v651_v17 = vpop.trf.xlu0  ;;  %v199_v14 = vld [vmem:[#allocation2 + $0x580] sm:$0xff]  ;;  %v198_v15 = vld [vmem:[#allocation2 + $0x578] sm:$0xff] }
 0x11c   :  { %1472 = vst [vmem:[#allocation5 + $0x48] sm:$0xff] %v683_v16  ;;  %1599 = vst [vmem:[#allocation5 + $0x440] sm:$0xff] %v651_v17 }
 0x11f   :  { %795 = vxpose.xlu1.b32.cont [5/16] %v127_v18, 128  ;;  %v684_v20 = vpop.trf.xlu1  ;;  %763 = vxpose.xlu0.b32.cont [5/16] %v126_v19, 128  ;;  %v652_v21 = vpop.trf.xlu0  ;;  %v204_v18 = vld [vmem:[#allocation2 + $0x5a8] sm:$0xff]  ;;  %v203_v19 = vld [vmem:[#allocation2 + $0x5a0] sm:$0xff] }
 0x120   :  { %1474 = vst [vmem:[#allocation5 + $0x58] sm:$0xff] %v684_v20  ;;  %1601 = vst [vmem:[#allocation5 + $0x450] sm:$0xff] %v652_v21 }
 0x123   :  { %796 = vxpose.xlu1.b32.cont [6/16] %v132_v22, 128  ;;  %v685_v24 = vpop.trf.xlu1  ;;  %764 = vxpose.xlu0.b32.cont [6/16] %v131_v23, 128  ;;  %v653_v25 = vpop.trf.xlu0  ;;  %v209_v22 = vld [vmem:[#allocation2 + $0x5d0] sm:$0xff]  ;;  %v208_v23 = vld [vmem:[#allocation2 + $0x5c8] sm:$0xff] }
 0x124   :  { %1476 = vst [vmem:[#allocation5 + $0x68] sm:$0xff] %v685_v24  ;;  %1603 = vst [vmem:[#allocation5 + $0x460] sm:$0xff] %v653_v25 }
 0x127   :  { %797 = vxpose.xlu1.b32.cont [7/16] %v137_v26, 128  ;;  %v686_v28 = vpop.trf.xlu1  ;;  %765 = vxpose.xlu0.b32.cont [7/16] %v136_v27, 128  ;;  %v654_v29 = vpop.trf.xlu0  ;;  %v214_v26 = vld [vmem:[#allocation2 + $0x5f8] sm:$0xff]  ;;  %v213_v27 = vld [vmem:[#allocation2 + $0x5f0] sm:$0xff] }
 0x128   :  { %1478 = vst [vmem:[#allocation5 + $0x78] sm:$0xff] %v686_v28  ;;  %1605 = vst [vmem:[#allocation5 + $0x470] sm:$0xff] %v654_v29 }
 0x12b   :  { %798 = vxpose.xlu1.b32.cont [8/16] %v142_v30, 128  ;;  %v687_v32 = vpop.trf.xlu1  ;;  %766 = vxpose.xlu0.b32.cont [8/16] %v141_v31, 128  ;;  %v655_v33 = vpop.trf.xlu0  ;;  %v219_v30 = vld [vmem:[#allocation2 + $0x620] sm:$0xff]  ;;  %v218_v31 = vld [vmem:[#allocation2 + $0x618] sm:$0xff] }
 0x12c   :  { %1480 = vst [vmem:[#allocation5 + $0x88] sm:$0xff] %v687_v32  ;;  %1607 = vst [vmem:[#allocation5 + $0x480] sm:$0xff] %v655_v33 }
 0x12f   :  { %799 = vxpose.xlu1.b32.cont [9/16] %v147_v34, 128  ;;  %v688_v36 = vpop.trf.xlu1  ;;  %767 = vxpose.xlu0.b32.cont [9/16] %v146_v35, 128  ;;  %v656_v37 = vpop.trf.xlu0  ;;  %v224_v34 = vld [vmem:[#allocation2 + $0x648] sm:$0xff]  ;;  %v223_v35 = vld [vmem:[#allocation2 + $0x640] sm:$0xff] }
 0x130   :  { %1482 = vst [vmem:[#allocation5 + $0x98] sm:$0xff] %v688_v36  ;;  %1609 = vst [vmem:[#allocation5 + $0x490] sm:$0xff] %v656_v37 }
 0x133   :  { %800 = vxpose.xlu1.b32.cont [10/16] %v152_v38, 128  ;;  %v689_v40 = vpop.trf.xlu1  ;;  %768 = vxpose.xlu0.b32.cont [10/16] %v151_v39, 128  ;;  %v657_v41 = vpop.trf.xlu0  ;;  %v229_v38 = vld [vmem:[#allocation2 + $0x670] sm:$0xff]  ;;  %v228_v39 = vld [vmem:[#allocation2 + $0x668] sm:$0xff] }
 0x134   :  { %1484 = vst [vmem:[#allocation5 + $0xa8] sm:$0xff] %v689_v40  ;;  %1611 = vst [vmem:[#allocation5 + $0x4a0] sm:$0xff] %v657_v41 }
 0x137   :  { %801 = vxpose.xlu1.b32.cont [11/16] %v157_v42, 128  ;;  %v690_v44 = vpop.trf.xlu1  ;;  %769 = vxpose.xlu0.b32.cont [11/16] %v156_v43, 128  ;;  %v658_v45 = vpop.trf.xlu0  ;;  %v234_v42 = vld [vmem:[#allocation2 + $0x698] sm:$0xff]  ;;  %v233_v43 = vld [vmem:[#allocation2 + $0x690] sm:$0xff] }
 0x138   :  { %1486 = vst [vmem:[#allocation5 + $0xb8] sm:$0xff] %v690_v44  ;;  %1613 = vst [vmem:[#allocation5 + $0x4b0] sm:$0xff] %v658_v45 }
 0x13b   :  { %802 = vxpose.xlu1.b32.cont [12/16] %v162_v46, 128  ;;  %v691_v48 = vpop.trf.xlu1  ;;  %770 = vxpose.xlu0.b32.cont [12/16] %v161_v47, 128  ;;  %v659_v49 = vpop.trf.xlu0  ;;  %v239_v46 = vld [vmem:[#allocation2 + $0x6c0] sm:$0xff]  ;;  %v238_v47 = vld [vmem:[#allocation2 + $0x6b8] sm:$0xff] }
 0x13c   :  { %1488 = vst [vmem:[#allocation5 + $0xc8] sm:$0xff] %v691_v48  ;;  %1615 = vst [vmem:[#allocation5 + $0x4c0] sm:$0xff] %v659_v49 }
 0x13f   :  { %803 = vxpose.xlu1.b32.cont [13/16] %v167_v50, 128  ;;  %v692_v52 = vpop.trf.xlu1  ;;  %771 = vxpose.xlu0.b32.cont [13/16] %v166_v51, 128  ;;  %v660_v53 = vpop.trf.xlu0  ;;  %v244_v50 = vld [vmem:[#allocation2 + $0x6e8] sm:$0xff]  ;;  %v243_v51 = vld [vmem:[#allocation2 + $0x6e0] sm:$0xff] }
 0x140   :  { %1490 = vst [vmem:[#allocation5 + $0xd8] sm:$0xff] %v692_v52  ;;  %1617 = vst [vmem:[#allocation5 + $0x4d0] sm:$0xff] %v660_v53 }
 0x143   :  { %804 = vxpose.xlu1.b32.cont [14/16] %v172_v54, 128  ;;  %v693_v56 = vpop.trf.xlu1  ;;  %772 = vxpose.xlu0.b32.cont [14/16] %v171_v55, 128  ;;  %v661_v57 = vpop.trf.xlu0  ;;  %v249_v54 = vld [vmem:[#allocation2 + $0x710] sm:$0xff]  ;;  %v248_v55 = vld [vmem:[#allocation2 + $0x708] sm:$0xff] }
 0x144   :  { %1492 = vst [vmem:[#allocation5 + $0xe8] sm:$0xff] %v693_v56  ;;  %1619 = vst [vmem:[#allocation5 + $0x4e0] sm:$0xff] %v661_v57 }
 0x147   :  { %805 = vxpose.xlu1.b32.cont [15/16] %v177_v58, 128  ;;  %v694_v60 = vpop.trf.xlu1  ;;  %773 = vxpose.xlu0.b32.cont [15/16] %v176_v59, 128  ;;  %v662_v61 = vpop.trf.xlu0  ;;  %v254_v58 = vld [vmem:[#allocation2 + $0x738] sm:$0xff]  ;;  %v253_v59 = vld [vmem:[#allocation2 + $0x730] sm:$0xff] }
 0x148   :  { %1494 = vst [vmem:[#allocation5 + $0xf8] sm:$0xff] %v694_v60  ;;  %1621 = vst [vmem:[#allocation5 + $0x4f0] sm:$0xff] %v662_v61 }
 0x14b   :  { %806 = vxpose.xlu1.b32.end [16/16] %v182_v62, 128  ;;  %v743_v0 = vpop.trf.xlu1  ;;  %774 = vxpose.xlu0.b32.end [16/16] %v181_v63, 128  ;;  %v711_v1 = vpop.trf.xlu0  ;;  %v259_v62 = vld [vmem:[#allocation2 + $0x760] sm:$0xff]  ;;  %v258_v63 = vld [vmem:[#allocation2 + $0x758] sm:$0xff] }
 0x14c   :  { %1528 = vst [vmem:[#allocation5 + $0x208] sm:$0xff] %v743_v0  ;;  %1496 = vst [vmem:[#allocation5 + $0x108] sm:$0xff] %v711_v1 }
 0x14f   :  { %855 = vxpose.xlu1.b32.start [1/16] %v184_v2, 128  ;;  %v744_v4 = vpop.trf.xlu1  ;;  %823 = vxpose.xlu0.b32.start [1/16] %v183_v3, 128  ;;  %v712_v5 = vpop.trf.xlu0  ;;  %v186_v2 = vld [vmem:[#allocation2 + $0x518] sm:$0xff]  ;;  %v185_v3 = vld [vmem:[#allocation2 + $0x510] sm:$0xff] }
 0x150   :  { %1530 = vst [vmem:[#allocation5 + $0x218] sm:$0xff] %v744_v4  ;;  %1498 = vst [vmem:[#allocation5 + $0x118] sm:$0xff] %v712_v5 }
 0x153   :  { %856 = vxpose.xlu1.b32.cont [2/16] %v189_v6, 128  ;;  %v745_v8 = vpop.trf.xlu1  ;;  %824 = vxpose.xlu0.b32.cont [2/16] %v188_v7, 128  ;;  %v713_v9 = vpop.trf.xlu0  ;;  %v191_v6 = vld [vmem:[#allocation2 + $0x540] sm:$0xff]  ;;  %v190_v7 = vld [vmem:[#allocation2 + $0x538] sm:$0xff] }
 0x154   :  { %1532 = vst [vmem:[#allocation5 + $0x228] sm:$0xff] %v745_v8  ;;  %1500 = vst [vmem:[#allocation5 + $0x128] sm:$0xff] %v713_v9 }
 0x157   :  { %857 = vxpose.xlu1.b32.cont [3/16] %v194_v10, 128  ;;  %v746_v12 = vpop.trf.xlu1  ;;  %825 = vxpose.xlu0.b32.cont [3/16] %v193_v11, 128  ;;  %v714_v13 = vpop.trf.xlu0  ;;  %v196_v10 = vld [vmem:[#allocation2 + $0x568] sm:$0xff]  ;;  %v195_v11 = vld [vmem:[#allocation2 + $0x560] sm:$0xff] }
 0x158   :  { %1534 = vst [vmem:[#allocation5 + $0x238] sm:$0xff] %v746_v12  ;;  %1502 = vst [vmem:[#allocation5 + $0x138] sm:$0xff] %v714_v13 }
 0x15b   :  { %858 = vxpose.xlu1.b32.cont [4/16] %v199_v14, 128  ;;  %v747_v16 = vpop.trf.xlu1  ;;  %826 = vxpose.xlu0.b32.cont [4/16] %v198_v15, 128  ;;  %v715_v17 = vpop.trf.xlu0  ;;  %v201_v14 = vld [vmem:[#allocation2 + $0x590] sm:$0xff]  ;;  %v200_v15 = vld [vmem:[#allocation2 + $0x588] sm:$0xff] }
 0x15c   :  { %1536 = vst [vmem:[#allocation5 + $0x248] sm:$0xff] %v747_v16  ;;  %1504 = vst [vmem:[#allocation5 + $0x148] sm:$0xff] %v715_v17 }
 0x15f   :  { %859 = vxpose.xlu1.b32.cont [5/16] %v204_v18, 128  ;;  %v748_v20 = vpop.trf.xlu1  ;;  %827 = vxpose.xlu0.b32.cont [5/16] %v203_v19, 128  ;;  %v716_v21 = vpop.trf.xlu0  ;;  %v206_v18 = vld [vmem:[#allocation2 + $0x5b8] sm:$0xff]  ;;  %v205_v19 = vld [vmem:[#allocation2 + $0x5b0] sm:$0xff] }
 0x160   :  { %1538 = vst [vmem:[#allocation5 + $0x258] sm:$0xff] %v748_v20  ;;  %1506 = vst [vmem:[#allocation5 + $0x158] sm:$0xff] %v716_v21 }
 0x163   :  { %860 = vxpose.xlu1.b32.cont [6/16] %v209_v22, 128  ;;  %v749_v24 = vpop.trf.xlu1  ;;  %828 = vxpose.xlu0.b32.cont [6/16] %v208_v23, 128  ;;  %v717_v25 = vpop.trf.xlu0  ;;  %v211_v22 = vld [vmem:[#allocation2 + $0x5e0] sm:$0xff]  ;;  %v210_v23 = vld [vmem:[#allocation2 + $0x5d8] sm:$0xff] }
 0x164   :  { %1540 = vst [vmem:[#allocation5 + $0x268] sm:$0xff] %v749_v24  ;;  %1508 = vst [vmem:[#allocation5 + $0x168] sm:$0xff] %v717_v25 }
 0x167   :  { %861 = vxpose.xlu1.b32.cont [7/16] %v214_v26, 128  ;;  %v750_v28 = vpop.trf.xlu1  ;;  %829 = vxpose.xlu0.b32.cont [7/16] %v213_v27, 128  ;;  %v718_v29 = vpop.trf.xlu0  ;;  %v216_v26 = vld [vmem:[#allocation2 + $0x608] sm:$0xff]  ;;  %v215_v27 = vld [vmem:[#allocation2 + $0x600] sm:$0xff] }
 0x168   :  { %1542 = vst [vmem:[#allocation5 + $0x278] sm:$0xff] %v750_v28  ;;  %1510 = vst [vmem:[#allocation5 + $0x178] sm:$0xff] %v718_v29 }
 0x16b   :  { %862 = vxpose.xlu1.b32.cont [8/16] %v219_v30, 128  ;;  %v751_v32 = vpop.trf.xlu1  ;;  %830 = vxpose.xlu0.b32.cont [8/16] %v218_v31, 128  ;;  %v719_v33 = vpop.trf.xlu0  ;;  %v221_v30 = vld [vmem:[#allocation2 + $0x630] sm:$0xff]  ;;  %v220_v31 = vld [vmem:[#allocation2 + $0x628] sm:$0xff] }
 0x16c   :  { %1544 = vst [vmem:[#allocation5 + $0x288] sm:$0xff] %v751_v32  ;;  %1512 = vst [vmem:[#allocation5 + $0x188] sm:$0xff] %v719_v33 }
 0x16f   :  { %863 = vxpose.xlu1.b32.cont [9/16] %v224_v34, 128  ;;  %v752_v36 = vpop.trf.xlu1  ;;  %831 = vxpose.xlu0.b32.cont [9/16] %v223_v35, 128  ;;  %v720_v37 = vpop.trf.xlu0  ;;  %v226_v34 = vld [vmem:[#allocation2 + $0x658] sm:$0xff]  ;;  %v225_v35 = vld [vmem:[#allocation2 + $0x650] sm:$0xff] }
 0x170   :  { %1546 = vst [vmem:[#allocation5 + $0x298] sm:$0xff] %v752_v36  ;;  %1514 = vst [vmem:[#allocation5 + $0x198] sm:$0xff] %v720_v37 }
 0x173   :  { %864 = vxpose.xlu1.b32.cont [10/16] %v229_v38, 128  ;;  %v753_v40 = vpop.trf.xlu1  ;;  %832 = vxpose.xlu0.b32.cont [10/16] %v228_v39, 128  ;;  %v721_v41 = vpop.trf.xlu0  ;;  %v231_v38 = vld [vmem:[#allocation2 + $0x680] sm:$0xff]  ;;  %v230_v39 = vld [vmem:[#allocation2 + $0x678] sm:$0xff] }
 0x174   :  { %1548 = vst [vmem:[#allocation5 + $0x2a8] sm:$0xff] %v753_v40  ;;  %1516 = vst [vmem:[#allocation5 + $0x1a8] sm:$0xff] %v721_v41 }
 0x177   :  { %865 = vxpose.xlu1.b32.cont [11/16] %v234_v42, 128  ;;  %v754_v44 = vpop.trf.xlu1  ;;  %833 = vxpose.xlu0.b32.cont [11/16] %v233_v43, 128  ;;  %v722_v45 = vpop.trf.xlu0  ;;  %v236_v42 = vld [vmem:[#allocation2 + $0x6a8] sm:$0xff]  ;;  %v235_v43 = vld [vmem:[#allocation2 + $0x6a0] sm:$0xff] }
 0x178   :  { %1550 = vst [vmem:[#allocation5 + $0x2b8] sm:$0xff] %v754_v44  ;;  %1518 = vst [vmem:[#allocation5 + $0x1b8] sm:$0xff] %v722_v45 }
 0x17b   :  { %866 = vxpose.xlu1.b32.cont [12/16] %v239_v46, 128  ;;  %v755_v48 = vpop.trf.xlu1  ;;  %834 = vxpose.xlu0.b32.cont [12/16] %v238_v47, 128  ;;  %v723_v49 = vpop.trf.xlu0  ;;  %v241_v46 = vld [vmem:[#allocation2 + $0x6d0] sm:$0xff]  ;;  %v240_v47 = vld [vmem:[#allocation2 + $0x6c8] sm:$0xff] }
 0x17c   :  { %1552 = vst [vmem:[#allocation5 + $0x2c8] sm:$0xff] %v755_v48  ;;  %1520 = vst [vmem:[#allocation5 + $0x1c8] sm:$0xff] %v723_v49 }
 0x17f   :  { %867 = vxpose.xlu1.b32.cont [13/16] %v244_v50, 128  ;;  %v756_v52 = vpop.trf.xlu1  ;;  %835 = vxpose.xlu0.b32.cont [13/16] %v243_v51, 128  ;;  %v724_v53 = vpop.trf.xlu0  ;;  %v246_v50 = vld [vmem:[#allocation2 + $0x6f8] sm:$0xff]  ;;  %v245_v51 = vld [vmem:[#allocation2 + $0x6f0] sm:$0xff] }
 0x180   :  { %1554 = vst [vmem:[#allocation5 + $0x2d8] sm:$0xff] %v756_v52  ;;  %1522 = vst [vmem:[#allocation5 + $0x1d8] sm:$0xff] %v724_v53 }
 0x183   :  { %868 = vxpose.xlu1.b32.cont [14/16] %v249_v54, 128  ;;  %v757_v56 = vpop.trf.xlu1  ;;  %836 = vxpose.xlu0.b32.cont [14/16] %v248_v55, 128  ;;  %v725_v57 = vpop.trf.xlu0  ;;  %v251_v54 = vld [vmem:[#allocation2 + $0x720] sm:$0xff]  ;;  %v250_v55 = vld [vmem:[#allocation2 + $0x718] sm:$0xff] }
 0x184   :  { %1556 = vst [vmem:[#allocation5 + $0x2e8] sm:$0xff] %v757_v56  ;;  %1524 = vst [vmem:[#allocation5 + $0x1e8] sm:$0xff] %v725_v57 }
 0x187   :  { %869 = vxpose.xlu1.b32.cont [15/16] %v254_v58, 128  ;;  %v758_v60 = vpop.trf.xlu1  ;;  %837 = vxpose.xlu0.b32.cont [15/16] %v253_v59, 128  ;;  %v726_v61 = vpop.trf.xlu0  ;;  %v256_v58 = vld [vmem:[#allocation2 + $0x748] sm:$0xff]  ;;  %v255_v59 = vld [vmem:[#allocation2 + $0x740] sm:$0xff] }
 0x188   :  { %1558 = vst [vmem:[#allocation5 + $0x2f8] sm:$0xff] %v758_v60  ;;  %1526 = vst [vmem:[#allocation5 + $0x1f8] sm:$0xff] %v726_v61 }
 0x18b   :  { %870 = vxpose.xlu1.b32.end [16/16] %v259_v62, 128  ;;  %v807_v0 = vpop.trf.xlu1  ;;  %838 = vxpose.xlu0.b32.end [16/16] %v258_v63, 128  ;;  %v775_v1 = vpop.trf.xlu0  ;;  %v261_v62 = vld [vmem:[#allocation2 + $0x770] sm:$0xff]  ;;  %v260_v63 = vld [vmem:[#allocation2 + $0x768] sm:$0xff] }
 0x18c   :  { %1592 = vst [vmem:[#allocation5 + $0x408] sm:$0xff] %v807_v0  ;;  %1560 = vst [vmem:[#allocation5 + $0x308] sm:$0xff] %v775_v1 }
 0x18f   :  { %919 = vxpose.xlu1.b32.start [1/16] %v186_v2, 128  ;;  %v808_v4 = vpop.trf.xlu1  ;;  %887 = vxpose.xlu0.b32.start [1/16] %v185_v3, 128  ;;  %v776_v5 = vpop.trf.xlu0  ;;  %v263_v2 = vld [vmem:[#allocation2 + $0x780] sm:$0xff] }
 0x190   :  { %1594 = vst [vmem:[#allocation5 + $0x418] sm:$0xff] %v808_v4  ;;  %1562 = vst [vmem:[#allocation5 + $0x318] sm:$0xff] %v776_v5  ;;  %v187_v3 = vld [vmem:[#allocation2 + $0x520] sm:$0xff] }
 0x193   :  { %920 = vxpose.xlu1.b32.cont [2/16] %v191_v6, 128  ;;  %v809_v8 = vpop.trf.xlu1  ;;  %888 = vxpose.xlu0.b32.cont [2/16] %v190_v7, 128  ;;  %v777_v9 = vpop.trf.xlu0  ;;  %v268_v6 = vld [vmem:[#allocation2 + $0x7a8] sm:$0xff] }
 0x194   :  { %1596 = vst [vmem:[#allocation5 + $0x428] sm:$0xff] %v809_v8  ;;  %1564 = vst [vmem:[#allocation5 + $0x328] sm:$0xff] %v777_v9  ;;  %v192_v7 = vld [vmem:[#allocation2 + $0x548] sm:$0xff] }
 0x197   :  { %921 = vxpose.xlu1.b32.cont [3/16] %v196_v10, 128  ;;  %v810_v12 = vpop.trf.xlu1  ;;  %889 = vxpose.xlu0.b32.cont [3/16] %v195_v11, 128  ;;  %v778_v13 = vpop.trf.xlu0  ;;  %v273_v10 = vld [vmem:[#allocation2 + $0x7d0] sm:$0xff] }
 0x198   :  { %1598 = vst [vmem:[#allocation5 + $0x438] sm:$0xff] %v810_v12  ;;  %1566 = vst [vmem:[#allocation5 + $0x338] sm:$0xff] %v778_v13  ;;  %v197_v11 = vld [vmem:[#allocation2 + $0x570] sm:$0xff] }
 0x19b   :  { %922 = vxpose.xlu1.b32.cont [4/16] %v201_v14, 128  ;;  %v811_v16 = vpop.trf.xlu1  ;;  %890 = vxpose.xlu0.b32.cont [4/16] %v200_v15, 128  ;;  %v779_v17 = vpop.trf.xlu0  ;;  %v278_v14 = vld [vmem:[#allocation2 + $0x7f8] sm:$0xff] }
 0x19c   :  { %1600 = vst [vmem:[#allocation5 + $0x448] sm:$0xff] %v811_v16  ;;  %1568 = vst [vmem:[#allocation5 + $0x348] sm:$0xff] %v779_v17  ;;  %v202_v15 = vld [vmem:[#allocation2 + $0x598] sm:$0xff] }
 0x19f   :  { %923 = vxpose.xlu1.b32.cont [5/16] %v206_v18, 128  ;;  %v812_v20 = vpop.trf.xlu1  ;;  %891 = vxpose.xlu0.b32.cont [5/16] %v205_v19, 128  ;;  %v780_v21 = vpop.trf.xlu0  ;;  %v283_v18 = vld [vmem:[#allocation2 + $0x820] sm:$0xff] }
 0x1a0   :  { %1602 = vst [vmem:[#allocation5 + $0x458] sm:$0xff] %v812_v20  ;;  %1570 = vst [vmem:[#allocation5 + $0x358] sm:$0xff] %v780_v21  ;;  %v207_v19 = vld [vmem:[#allocation2 + $0x5c0] sm:$0xff] }
 0x1a3   :  { %924 = vxpose.xlu1.b32.cont [6/16] %v211_v22, 128  ;;  %v813_v24 = vpop.trf.xlu1  ;;  %892 = vxpose.xlu0.b32.cont [6/16] %v210_v23, 128  ;;  %v781_v25 = vpop.trf.xlu0  ;;  %v288_v22 = vld [vmem:[#allocation2 + $0x848] sm:$0xff] }
 0x1a4   :  { %1604 = vst [vmem:[#allocation5 + $0x468] sm:$0xff] %v813_v24  ;;  %1572 = vst [vmem:[#allocation5 + $0x368] sm:$0xff] %v781_v25  ;;  %v212_v23 = vld [vmem:[#allocation2 + $0x5e8] sm:$0xff] }
 0x1a7   :  { %925 = vxpose.xlu1.b32.cont [7/16] %v216_v26, 128  ;;  %v814_v28 = vpop.trf.xlu1  ;;  %893 = vxpose.xlu0.b32.cont [7/16] %v215_v27, 128  ;;  %v782_v29 = vpop.trf.xlu0  ;;  %v293_v26 = vld [vmem:[#allocation2 + $0x870] sm:$0xff] }
 0x1a8   :  { %1606 = vst [vmem:[#allocation5 + $0x478] sm:$0xff] %v814_v28  ;;  %1574 = vst [vmem:[#allocation5 + $0x378] sm:$0xff] %v782_v29  ;;  %v217_v27 = vld [vmem:[#allocation2 + $0x610] sm:$0xff] }
 0x1ab   :  { %926 = vxpose.xlu1.b32.cont [8/16] %v221_v30, 128  ;;  %v815_v32 = vpop.trf.xlu1  ;;  %894 = vxpose.xlu0.b32.cont [8/16] %v220_v31, 128  ;;  %v783_v33 = vpop.trf.xlu0  ;;  %v298_v30 = vld [vmem:[#allocation2 + $0x898] sm:$0xff] }
 0x1ac   :  { %1608 = vst [vmem:[#allocation5 + $0x488] sm:$0xff] %v815_v32  ;;  %1576 = vst [vmem:[#allocation5 + $0x388] sm:$0xff] %v783_v33  ;;  %v222_v31 = vld [vmem:[#allocation2 + $0x638] sm:$0xff] }
 0x1af   :  { %927 = vxpose.xlu1.b32.cont [9/16] %v226_v34, 128  ;;  %v816_v36 = vpop.trf.xlu1  ;;  %895 = vxpose.xlu0.b32.cont [9/16] %v225_v35, 128  ;;  %v784_v37 = vpop.trf.xlu0  ;;  %v303_v34 = vld [vmem:[#allocation2 + $0x8c0] sm:$0xff] }
 0x1b0   :  { %1610 = vst [vmem:[#allocation5 + $0x498] sm:$0xff] %v816_v36  ;;  %1578 = vst [vmem:[#allocation5 + $0x398] sm:$0xff] %v784_v37  ;;  %v227_v35 = vld [vmem:[#allocation2 + $0x660] sm:$0xff] }
 0x1b3   :  { %928 = vxpose.xlu1.b32.cont [10/16] %v231_v38, 128  ;;  %v817_v40 = vpop.trf.xlu1  ;;  %896 = vxpose.xlu0.b32.cont [10/16] %v230_v39, 128  ;;  %v785_v41 = vpop.trf.xlu0  ;;  %v308_v38 = vld [vmem:[#allocation2 + $0x8e8] sm:$0xff] }
 0x1b4   :  { %1612 = vst [vmem:[#allocation5 + $0x4a8] sm:$0xff] %v817_v40  ;;  %1580 = vst [vmem:[#allocation5 + $0x3a8] sm:$0xff] %v785_v41  ;;  %v232_v39 = vld [vmem:[#allocation2 + $0x688] sm:$0xff] }
 0x1b7   :  { %929 = vxpose.xlu1.b32.cont [11/16] %v236_v42, 128  ;;  %v818_v44 = vpop.trf.xlu1  ;;  %897 = vxpose.xlu0.b32.cont [11/16] %v235_v43, 128  ;;  %v786_v45 = vpop.trf.xlu0  ;;  %v313_v42 = vld [vmem:[#allocation2 + $0x910] sm:$0xff] }
 0x1b8   :  { %1614 = vst [vmem:[#allocation5 + $0x4b8] sm:$0xff] %v818_v44  ;;  %1582 = vst [vmem:[#allocation5 + $0x3b8] sm:$0xff] %v786_v45  ;;  %v237_v43 = vld [vmem:[#allocation2 + $0x6b0] sm:$0xff] }
 0x1bb   :  { %930 = vxpose.xlu1.b32.cont [12/16] %v241_v46, 128  ;;  %v819_v48 = vpop.trf.xlu1  ;;  %898 = vxpose.xlu0.b32.cont [12/16] %v240_v47, 128  ;;  %v787_v49 = vpop.trf.xlu0  ;;  %v318_v46 = vld [vmem:[#allocation2 + $0x938] sm:$0xff] }
 0x1bc   :  { %1616 = vst [vmem:[#allocation5 + $0x4c8] sm:$0xff] %v819_v48  ;;  %1584 = vst [vmem:[#allocation5 + $0x3c8] sm:$0xff] %v787_v49  ;;  %v242_v47 = vld [vmem:[#allocation2 + $0x6d8] sm:$0xff] }
 0x1bf   :  { %931 = vxpose.xlu1.b32.cont [13/16] %v246_v50, 128  ;;  %v820_v52 = vpop.trf.xlu1  ;;  %899 = vxpose.xlu0.b32.cont [13/16] %v245_v51, 128  ;;  %v788_v53 = vpop.trf.xlu0  ;;  %v323_v50 = vld [vmem:[#allocation2 + $0x960] sm:$0xff] }
 0x1c0   :  { %1618 = vst [vmem:[#allocation5 + $0x4d8] sm:$0xff] %v820_v52  ;;  %1586 = vst [vmem:[#allocation5 + $0x3d8] sm:$0xff] %v788_v53  ;;  %v247_v51 = vld [vmem:[#allocation2 + $0x700] sm:$0xff] }
 0x1c3   :  { %932 = vxpose.xlu1.b32.cont [14/16] %v251_v54, 128  ;;  %v821_v56 = vpop.trf.xlu1  ;;  %900 = vxpose.xlu0.b32.cont [14/16] %v250_v55, 128  ;;  %v789_v57 = vpop.trf.xlu0  ;;  %v328_v54 = vld [vmem:[#allocation2 + $0x988] sm:$0xff] }
 0x1c4   :  { %1620 = vst [vmem:[#allocation5 + $0x4e8] sm:$0xff] %v821_v56  ;;  %1588 = vst [vmem:[#allocation5 + $0x3e8] sm:$0xff] %v789_v57  ;;  %v252_v55 = vld [vmem:[#allocation2 + $0x728] sm:$0xff] }
 0x1c7   :  { %933 = vxpose.xlu1.b32.cont [15/16] %v256_v58, 128  ;;  %v822_v60 = vpop.trf.xlu1  ;;  %901 = vxpose.xlu0.b32.cont [15/16] %v255_v59, 128  ;;  %v790_v61 = vpop.trf.xlu0  ;;  %v333_v58 = vld [vmem:[#allocation2 + $0x9b0] sm:$0xff] }
 0x1c8   :  { %1622 = vst [vmem:[#allocation5 + $0x4f8] sm:$0xff] %v822_v60  ;;  %1590 = vst [vmem:[#allocation5 + $0x3f8] sm:$0xff] %v790_v61  ;;  %v257_v59 = vld [vmem:[#allocation2 + $0x750] sm:$0xff] }
 0x1cb   :  { %934 = vxpose.xlu1.b32.end [16/16] %v261_v62, 128  ;;  %v871_v0 = vpop.trf.xlu1  ;;  %902 = vxpose.xlu0.b32.end [16/16] %v260_v63, 128  ;;  %v839_v1 = vpop.trf.xlu0  ;;  %v338_v62 = vld [vmem:[#allocation2 + $0x9d8] sm:$0xff] }
 0x1cc   :  { %1655 = vst [vmem:[#allocation5 + $0x600] sm:$0xff] %v871_v0  ;;  %1623 = vst [vmem:[#allocation5 + $0x500] sm:$0xff] %v839_v1  ;;  %v262_v63 = vld [vmem:[#allocation2 + $0x778] sm:$0xff] }
 0x1cf   :  { %983 = vxpose.xlu1.b32.start [1/16] %v263_v2, 128  ;;  %v872_v4 = vpop.trf.xlu1  ;;  %951 = vxpose.xlu0.b32.start [1/16] %v187_v3, 128  ;;  %v840_v5 = vpop.trf.xlu0  ;;  %v265_v2 = vld [vmem:[#allocation2 + $0x790] sm:$0xff]  ;;  %v264_v3 = vld [vmem:[#allocation2 + $0x788] sm:$0xff] }
 0x1d0   :  { %1657 = vst [vmem:[#allocation5 + $0x610] sm:$0xff] %v872_v4  ;;  %1625 = vst [vmem:[#allocation5 + $0x510] sm:$0xff] %v840_v5 }
 0x1d3   :  { %984 = vxpose.xlu1.b32.cont [2/16] %v268_v6, 128  ;;  %v873_v8 = vpop.trf.xlu1  ;;  %952 = vxpose.xlu0.b32.cont [2/16] %v192_v7, 128  ;;  %v841_v9 = vpop.trf.xlu0  ;;  %v270_v6 = vld [vmem:[#allocation2 + $0x7b8] sm:$0xff]  ;;  %v269_v7 = vld [vmem:[#allocation2 + $0x7b0] sm:$0xff] }
 0x1d4   :  { %1659 = vst [vmem:[#allocation5 + $0x620] sm:$0xff] %v873_v8  ;;  %1627 = vst [vmem:[#allocation5 + $0x520] sm:$0xff] %v841_v9 }
 0x1d7   :  { %985 = vxpose.xlu1.b32.cont [3/16] %v273_v10, 128  ;;  %v874_v12 = vpop.trf.xlu1  ;;  %953 = vxpose.xlu0.b32.cont [3/16] %v197_v11, 128  ;;  %v842_v13 = vpop.trf.xlu0  ;;  %v275_v10 = vld [vmem:[#allocation2 + $0x7e0] sm:$0xff]  ;;  %v274_v11 = vld [vmem:[#allocation2 + $0x7d8] sm:$0xff] }
 0x1d8   :  { %1661 = vst [vmem:[#allocation5 + $0x630] sm:$0xff] %v874_v12  ;;  %1629 = vst [vmem:[#allocation5 + $0x530] sm:$0xff] %v842_v13 }
 0x1db   :  { %986 = vxpose.xlu1.b32.cont [4/16] %v278_v14, 128  ;;  %v875_v16 = vpop.trf.xlu1  ;;  %954 = vxpose.xlu0.b32.cont [4/16] %v202_v15, 128  ;;  %v843_v17 = vpop.trf.xlu0  ;;  %v280_v14 = vld [vmem:[#allocation2 + $0x808] sm:$0xff]  ;;  %v279_v15 = vld [vmem:[#allocation2 + $0x800] sm:$0xff] }
 0x1dc   :  { %1663 = vst [vmem:[#allocation5 + $0x640] sm:$0xff] %v875_v16  ;;  %1631 = vst [vmem:[#allocation5 + $0x540] sm:$0xff] %v843_v17 }
 0x1df   :  { %987 = vxpose.xlu1.b32.cont [5/16] %v283_v18, 128  ;;  %v876_v20 = vpop.trf.xlu1  ;;  %955 = vxpose.xlu0.b32.cont [5/16] %v207_v19, 128  ;;  %v844_v21 = vpop.trf.xlu0  ;;  %v285_v18 = vld [vmem:[#allocation2 + $0x830] sm:$0xff]  ;;  %v284_v19 = vld [vmem:[#allocation2 + $0x828] sm:$0xff] }
 0x1e0   :  { %1665 = vst [vmem:[#allocation5 + $0x650] sm:$0xff] %v876_v20  ;;  %1633 = vst [vmem:[#allocation5 + $0x550] sm:$0xff] %v844_v21 }
 0x1e3   :  { %988 = vxpose.xlu1.b32.cont [6/16] %v288_v22, 128  ;;  %v877_v24 = vpop.trf.xlu1  ;;  %956 = vxpose.xlu0.b32.cont [6/16] %v212_v23, 128  ;;  %v845_v25 = vpop.trf.xlu0  ;;  %v290_v22 = vld [vmem:[#allocation2 + $0x858] sm:$0xff]  ;;  %v289_v23 = vld [vmem:[#allocation2 + $0x850] sm:$0xff] }
 0x1e4   :  { %1667 = vst [vmem:[#allocation5 + $0x660] sm:$0xff] %v877_v24  ;;  %1635 = vst [vmem:[#allocation5 + $0x560] sm:$0xff] %v845_v25 }
 0x1e7   :  { %989 = vxpose.xlu1.b32.cont [7/16] %v293_v26, 128  ;;  %v878_v28 = vpop.trf.xlu1  ;;  %957 = vxpose.xlu0.b32.cont [7/16] %v217_v27, 128  ;;  %v846_v29 = vpop.trf.xlu0  ;;  %v295_v26 = vld [vmem:[#allocation2 + $0x880] sm:$0xff]  ;;  %v294_v27 = vld [vmem:[#allocation2 + $0x878] sm:$0xff] }
 0x1e8   :  { %1669 = vst [vmem:[#allocation5 + $0x670] sm:$0xff] %v878_v28  ;;  %1637 = vst [vmem:[#allocation5 + $0x570] sm:$0xff] %v846_v29 }
 0x1eb   :  { %990 = vxpose.xlu1.b32.cont [8/16] %v298_v30, 128  ;;  %v879_v32 = vpop.trf.xlu1  ;;  %958 = vxpose.xlu0.b32.cont [8/16] %v222_v31, 128  ;;  %v847_v33 = vpop.trf.xlu0  ;;  %v300_v30 = vld [vmem:[#allocation2 + $0x8a8] sm:$0xff]  ;;  %v299_v31 = vld [vmem:[#allocation2 + $0x8a0] sm:$0xff] }
 0x1ec   :  { %1671 = vst [vmem:[#allocation5 + $0x680] sm:$0xff] %v879_v32  ;;  %1639 = vst [vmem:[#allocation5 + $0x580] sm:$0xff] %v847_v33 }
 0x1ef   :  { %991 = vxpose.xlu1.b32.cont [9/16] %v303_v34, 128  ;;  %v880_v36 = vpop.trf.xlu1  ;;  %959 = vxpose.xlu0.b32.cont [9/16] %v227_v35, 128  ;;  %v848_v37 = vpop.trf.xlu0  ;;  %v305_v34 = vld [vmem:[#allocation2 + $0x8d0] sm:$0xff]  ;;  %v304_v35 = vld [vmem:[#allocation2 + $0x8c8] sm:$0xff] }
 0x1f0   :  { %1673 = vst [vmem:[#allocation5 + $0x690] sm:$0xff] %v880_v36  ;;  %1641 = vst [vmem:[#allocation5 + $0x590] sm:$0xff] %v848_v37 }
 0x1f3   :  { %992 = vxpose.xlu1.b32.cont [10/16] %v308_v38, 128  ;;  %v881_v40 = vpop.trf.xlu1  ;;  %960 = vxpose.xlu0.b32.cont [10/16] %v232_v39, 128  ;;  %v849_v41 = vpop.trf.xlu0  ;;  %v310_v38 = vld [vmem:[#allocation2 + $0x8f8] sm:$0xff]  ;;  %v309_v39 = vld [vmem:[#allocation2 + $0x8f0] sm:$0xff] }
 0x1f4   :  { %1675 = vst [vmem:[#allocation5 + $0x6a0] sm:$0xff] %v881_v40  ;;  %1643 = vst [vmem:[#allocation5 + $0x5a0] sm:$0xff] %v849_v41 }
 0x1f7   :  { %993 = vxpose.xlu1.b32.cont [11/16] %v313_v42, 128  ;;  %v882_v44 = vpop.trf.xlu1  ;;  %961 = vxpose.xlu0.b32.cont [11/16] %v237_v43, 128  ;;  %v850_v45 = vpop.trf.xlu0  ;;  %v315_v42 = vld [vmem:[#allocation2 + $0x920] sm:$0xff]  ;;  %v314_v43 = vld [vmem:[#allocation2 + $0x918] sm:$0xff] }
 0x1f8   :  { %1677 = vst [vmem:[#allocation5 + $0x6b0] sm:$0xff] %v882_v44  ;;  %1645 = vst [vmem:[#allocation5 + $0x5b0] sm:$0xff] %v850_v45 }
 0x1fb   :  { %994 = vxpose.xlu1.b32.cont [12/16] %v318_v46, 128  ;;  %v883_v48 = vpop.trf.xlu1  ;;  %962 = vxpose.xlu0.b32.cont [12/16] %v242_v47, 128  ;;  %v851_v49 = vpop.trf.xlu0  ;;  %v320_v46 = vld [vmem:[#allocation2 + $0x948] sm:$0xff]  ;;  %v319_v47 = vld [vmem:[#allocation2 + $0x940] sm:$0xff] }
 0x1fc   :  { %1679 = vst [vmem:[#allocation5 + $0x6c0] sm:$0xff] %v883_v48  ;;  %1647 = vst [vmem:[#allocation5 + $0x5c0] sm:$0xff] %v851_v49 }
 0x1ff   :  { %995 = vxpose.xlu1.b32.cont [13/16] %v323_v50, 128  ;;  %v884_v52 = vpop.trf.xlu1  ;;  %963 = vxpose.xlu0.b32.cont [13/16] %v247_v51, 128  ;;  %v852_v53 = vpop.trf.xlu0  ;;  %v325_v50 = vld [vmem:[#allocation2 + $0x970] sm:$0xff]  ;;  %v324_v51 = vld [vmem:[#allocation2 + $0x968] sm:$0xff] }
 0x200   :  { %1681 = vst [vmem:[#allocation5 + $0x6d0] sm:$0xff] %v884_v52  ;;  %1649 = vst [vmem:[#allocation5 + $0x5d0] sm:$0xff] %v852_v53 }
 0x203   :  { %996 = vxpose.xlu1.b32.cont [14/16] %v328_v54, 128  ;;  %v885_v56 = vpop.trf.xlu1  ;;  %964 = vxpose.xlu0.b32.cont [14/16] %v252_v55, 128  ;;  %v853_v57 = vpop.trf.xlu0  ;;  %v330_v54 = vld [vmem:[#allocation2 + $0x998] sm:$0xff]  ;;  %v329_v55 = vld [vmem:[#allocation2 + $0x990] sm:$0xff] }
 0x204   :  { %1683 = vst [vmem:[#allocation5 + $0x6e0] sm:$0xff] %v885_v56  ;;  %1651 = vst [vmem:[#allocation5 + $0x5e0] sm:$0xff] %v853_v57 }
 0x207   :  { %997 = vxpose.xlu1.b32.cont [15/16] %v333_v58, 128  ;;  %v886_v60 = vpop.trf.xlu1  ;;  %965 = vxpose.xlu0.b32.cont [15/16] %v257_v59, 128  ;;  %v854_v61 = vpop.trf.xlu0  ;;  %v335_v58 = vld [vmem:[#allocation2 + $0x9c0] sm:$0xff]  ;;  %v334_v59 = vld [vmem:[#allocation2 + $0x9b8] sm:$0xff] }
 0x208   :  { %1685 = vst [vmem:[#allocation5 + $0x6f0] sm:$0xff] %v886_v60  ;;  %1653 = vst [vmem:[#allocation5 + $0x5f0] sm:$0xff] %v854_v61 }
 0x20b   :  { %998 = vxpose.xlu1.b32.end [16/16] %v338_v62, 128  ;;  %v935_v0 = vpop.trf.xlu1  ;;  %966 = vxpose.xlu0.b32.end [16/16] %v262_v63, 128  ;;  %v903_v1 = vpop.trf.xlu0  ;;  %v340_v62 = vld [vmem:[#allocation2 + $0x9e8] sm:$0xff]  ;;  %v339_v63 = vld [vmem:[#allocation2 + $0x9e0] sm:$0xff] }
 0x20c   :  { %1719 = vst [vmem:[#allocation5 + $0x800] sm:$0xff] %v935_v0  ;;  %1687 = vst [vmem:[#allocation5 + $0x700] sm:$0xff] %v903_v1 }
 0x20f   :  { %1047 = vxpose.xlu1.b32.start [1/16] %v265_v2, 128  ;;  %v936_v4 = vpop.trf.xlu1  ;;  %1015 = vxpose.xlu0.b32.start [1/16] %v264_v3, 128  ;;  %v904_v5 = vpop.trf.xlu0  ;;  %v267_v2 = vld [vmem:[#allocation2 + $0x7a0] sm:$0xff]  ;;  %v266_v3 = vld [vmem:[#allocation2 + $0x798] sm:$0xff] }
 0x210   :  { %1721 = vst [vmem:[#allocation5 + $0x810] sm:$0xff] %v936_v4  ;;  %1689 = vst [vmem:[#allocation5 + $0x710] sm:$0xff] %v904_v5 }
 0x213   :  { %1048 = vxpose.xlu1.b32.cont [2/16] %v270_v6, 128  ;;  %v937_v8 = vpop.trf.xlu1  ;;  %1016 = vxpose.xlu0.b32.cont [2/16] %v269_v7, 128  ;;  %v905_v9 = vpop.trf.xlu0  ;;  %v272_v6 = vld [vmem:[#allocation2 + $0x7c8] sm:$0xff]  ;;  %v271_v7 = vld [vmem:[#allocation2 + $0x7c0] sm:$0xff] }
 0x214   :  { %1723 = vst [vmem:[#allocation5 + $0x820] sm:$0xff] %v937_v8  ;;  %1691 = vst [vmem:[#allocation5 + $0x720] sm:$0xff] %v905_v9 }
 0x217   :  { %1049 = vxpose.xlu1.b32.cont [3/16] %v275_v10, 128  ;;  %v938_v12 = vpop.trf.xlu1  ;;  %1017 = vxpose.xlu0.b32.cont [3/16] %v274_v11, 128  ;;  %v906_v13 = vpop.trf.xlu0  ;;  %v277_v10 = vld [vmem:[#allocation2 + $0x7f0] sm:$0xff]  ;;  %v276_v11 = vld [vmem:[#allocation2 + $0x7e8] sm:$0xff] }
 0x218   :  { %1725 = vst [vmem:[#allocation5 + $0x830] sm:$0xff] %v938_v12  ;;  %1693 = vst [vmem:[#allocation5 + $0x730] sm:$0xff] %v906_v13 }
 0x21b   :  { %1050 = vxpose.xlu1.b32.cont [4/16] %v280_v14, 128  ;;  %v939_v16 = vpop.trf.xlu1  ;;  %1018 = vxpose.xlu0.b32.cont [4/16] %v279_v15, 128  ;;  %v907_v17 = vpop.trf.xlu0  ;;  %v282_v14 = vld [vmem:[#allocation2 + $0x818] sm:$0xff]  ;;  %v281_v15 = vld [vmem:[#allocation2 + $0x810] sm:$0xff] }
 0x21c   :  { %1727 = vst [vmem:[#allocation5 + $0x840] sm:$0xff] %v939_v16  ;;  %1695 = vst [vmem:[#allocation5 + $0x740] sm:$0xff] %v907_v17 }
 0x21f   :  { %1051 = vxpose.xlu1.b32.cont [5/16] %v285_v18, 128  ;;  %v940_v20 = vpop.trf.xlu1  ;;  %1019 = vxpose.xlu0.b32.cont [5/16] %v284_v19, 128  ;;  %v908_v21 = vpop.trf.xlu0  ;;  %v287_v18 = vld [vmem:[#allocation2 + $0x840] sm:$0xff]  ;;  %v286_v19 = vld [vmem:[#allocation2 + $0x838] sm:$0xff] }
 0x220   :  { %1729 = vst [vmem:[#allocation5 + $0x850] sm:$0xff] %v940_v20  ;;  %1697 = vst [vmem:[#allocation5 + $0x750] sm:$0xff] %v908_v21 }
 0x223   :  { %1052 = vxpose.xlu1.b32.cont [6/16] %v290_v22, 128  ;;  %v941_v24 = vpop.trf.xlu1  ;;  %1020 = vxpose.xlu0.b32.cont [6/16] %v289_v23, 128  ;;  %v909_v25 = vpop.trf.xlu0  ;;  %v292_v22 = vld [vmem:[#allocation2 + $0x868] sm:$0xff]  ;;  %v291_v23 = vld [vmem:[#allocation2 + $0x860] sm:$0xff] }
 0x224   :  { %1731 = vst [vmem:[#allocation5 + $0x860] sm:$0xff] %v941_v24  ;;  %1699 = vst [vmem:[#allocation5 + $0x760] sm:$0xff] %v909_v25 }
 0x227   :  { %1053 = vxpose.xlu1.b32.cont [7/16] %v295_v26, 128  ;;  %v942_v28 = vpop.trf.xlu1  ;;  %1021 = vxpose.xlu0.b32.cont [7/16] %v294_v27, 128  ;;  %v910_v29 = vpop.trf.xlu0  ;;  %v297_v26 = vld [vmem:[#allocation2 + $0x890] sm:$0xff]  ;;  %v296_v27 = vld [vmem:[#allocation2 + $0x888] sm:$0xff] }
 0x228   :  { %1733 = vst [vmem:[#allocation5 + $0x870] sm:$0xff] %v942_v28  ;;  %1701 = vst [vmem:[#allocation5 + $0x770] sm:$0xff] %v910_v29 }
 0x22b   :  { %1054 = vxpose.xlu1.b32.cont [8/16] %v300_v30, 128  ;;  %v943_v32 = vpop.trf.xlu1  ;;  %1022 = vxpose.xlu0.b32.cont [8/16] %v299_v31, 128  ;;  %v911_v33 = vpop.trf.xlu0  ;;  %v302_v30 = vld [vmem:[#allocation2 + $0x8b8] sm:$0xff]  ;;  %v301_v31 = vld [vmem:[#allocation2 + $0x8b0] sm:$0xff] }
 0x22c   :  { %1735 = vst [vmem:[#allocation5 + $0x880] sm:$0xff] %v943_v32  ;;  %1703 = vst [vmem:[#allocation5 + $0x780] sm:$0xff] %v911_v33 }
 0x22f   :  { %1055 = vxpose.xlu1.b32.cont [9/16] %v305_v34, 128  ;;  %v944_v36 = vpop.trf.xlu1  ;;  %1023 = vxpose.xlu0.b32.cont [9/16] %v304_v35, 128  ;;  %v912_v37 = vpop.trf.xlu0  ;;  %v307_v34 = vld [vmem:[#allocation2 + $0x8e0] sm:$0xff]  ;;  %v306_v35 = vld [vmem:[#allocation2 + $0x8d8] sm:$0xff] }
 0x230   :  { %1737 = vst [vmem:[#allocation5 + $0x890] sm:$0xff] %v944_v36  ;;  %1705 = vst [vmem:[#allocation5 + $0x790] sm:$0xff] %v912_v37 }
 0x233   :  { %1056 = vxpose.xlu1.b32.cont [10/16] %v310_v38, 128  ;;  %v945_v40 = vpop.trf.xlu1  ;;  %1024 = vxpose.xlu0.b32.cont [10/16] %v309_v39, 128  ;;  %v913_v41 = vpop.trf.xlu0  ;;  %v312_v38 = vld [vmem:[#allocation2 + $0x908] sm:$0xff]  ;;  %v311_v39 = vld [vmem:[#allocation2 + $0x900] sm:$0xff] }
 0x234   :  { %1739 = vst [vmem:[#allocation5 + $0x8a0] sm:$0xff] %v945_v40  ;;  %1707 = vst [vmem:[#allocation5 + $0x7a0] sm:$0xff] %v913_v41 }
 0x237   :  { %1057 = vxpose.xlu1.b32.cont [11/16] %v315_v42, 128  ;;  %v946_v44 = vpop.trf.xlu1  ;;  %1025 = vxpose.xlu0.b32.cont [11/16] %v314_v43, 128  ;;  %v914_v45 = vpop.trf.xlu0  ;;  %v317_v42 = vld [vmem:[#allocation2 + $0x930] sm:$0xff]  ;;  %v316_v43 = vld [vmem:[#allocation2 + $0x928] sm:$0xff] }
 0x238   :  { %1741 = vst [vmem:[#allocation5 + $0x8b0] sm:$0xff] %v946_v44  ;;  %1709 = vst [vmem:[#allocation5 + $0x7b0] sm:$0xff] %v914_v45 }
 0x23b   :  { %1058 = vxpose.xlu1.b32.cont [12/16] %v320_v46, 128  ;;  %v947_v48 = vpop.trf.xlu1  ;;  %1026 = vxpose.xlu0.b32.cont [12/16] %v319_v47, 128  ;;  %v915_v49 = vpop.trf.xlu0  ;;  %v322_v46 = vld [vmem:[#allocation2 + $0x958] sm:$0xff]  ;;  %v321_v47 = vld [vmem:[#allocation2 + $0x950] sm:$0xff] }
 0x23c   :  { %1743 = vst [vmem:[#allocation5 + $0x8c0] sm:$0xff] %v947_v48  ;;  %1711 = vst [vmem:[#allocation5 + $0x7c0] sm:$0xff] %v915_v49 }
 0x23f   :  { %1059 = vxpose.xlu1.b32.cont [13/16] %v325_v50, 128  ;;  %v948_v52 = vpop.trf.xlu1  ;;  %1027 = vxpose.xlu0.b32.cont [13/16] %v324_v51, 128  ;;  %v916_v53 = vpop.trf.xlu0  ;;  %v327_v50 = vld [vmem:[#allocation2 + $0x980] sm:$0xff]  ;;  %v326_v51 = vld [vmem:[#allocation2 + $0x978] sm:$0xff] }
 0x240   :  { %1745 = vst [vmem:[#allocation5 + $0x8d0] sm:$0xff] %v948_v52  ;;  %1713 = vst [vmem:[#allocation5 + $0x7d0] sm:$0xff] %v916_v53 }
 0x243   :  { %1060 = vxpose.xlu1.b32.cont [14/16] %v330_v54, 128  ;;  %v949_v56 = vpop.trf.xlu1  ;;  %1028 = vxpose.xlu0.b32.cont [14/16] %v329_v55, 128  ;;  %v917_v57 = vpop.trf.xlu0  ;;  %v332_v54 = vld [vmem:[#allocation2 + $0x9a8] sm:$0xff]  ;;  %v331_v55 = vld [vmem:[#allocation2 + $0x9a0] sm:$0xff] }
 0x244   :  { %1747 = vst [vmem:[#allocation5 + $0x8e0] sm:$0xff] %v949_v56  ;;  %1715 = vst [vmem:[#allocation5 + $0x7e0] sm:$0xff] %v917_v57 }
 0x247   :  { %1061 = vxpose.xlu1.b32.cont [15/16] %v335_v58, 128  ;;  %v950_v60 = vpop.trf.xlu1  ;;  %1029 = vxpose.xlu0.b32.cont [15/16] %v334_v59, 128  ;;  %v918_v61 = vpop.trf.xlu0  ;;  %v337_v58 = vld [vmem:[#allocation2 + $0x9d0] sm:$0xff]  ;;  %v336_v59 = vld [vmem:[#allocation2 + $0x9c8] sm:$0xff] }
 0x248   :  { %1749 = vst [vmem:[#allocation5 + $0x8f0] sm:$0xff] %v950_v60  ;;  %1717 = vst [vmem:[#allocation5 + $0x7f0] sm:$0xff] %v918_v61 }
 0x24b   :  { %1062 = vxpose.xlu1.b32.end [16/16] %v340_v62, 128  ;;  %v999_v0 = vpop.trf.xlu1  ;;  %1030 = vxpose.xlu0.b32.end [16/16] %v339_v63, 128  ;;  %v967_v1 = vpop.trf.xlu0  ;;  %v342_v62 = vld [vmem:[#allocation2 + $0x9f8] sm:$0xff]  ;;  %v341_v63 = vld [vmem:[#allocation2 + $0x9f0] sm:$0xff] }
 0x24c   :  { %1624 = vst [vmem:[#allocation5 + $0x508] sm:$0xff] %v999_v0  ;;  %1751 = vst [vmem:[#allocation5 + $0x900] sm:$0xff] %v967_v1 }
 0x24f   :  { %1111 = vxpose.xlu1.b32.start [1/16] %v267_v2, 128  ;;  %v1000_v4 = vpop.trf.xlu1  ;;  %1079 = vxpose.xlu0.b32.start [1/16] %v266_v3, 128  ;;  %v968_v5 = vpop.trf.xlu0  ;;  %v344_v2 = vld [vmem:[#allocation2 + $0xa08] sm:$0xff]  ;;  %v343_v3 = vld [vmem:[#allocation2 + $0xa00] sm:$0xff] }
 0x250   :  { %1626 = vst [vmem:[#allocation5 + $0x518] sm:$0xff] %v1000_v4  ;;  %1753 = vst [vmem:[#allocation5 + $0x910] sm:$0xff] %v968_v5 }
 0x253   :  { %1112 = vxpose.xlu1.b32.cont [2/16] %v272_v6, 128  ;;  %v1001_v8 = vpop.trf.xlu1  ;;  %1080 = vxpose.xlu0.b32.cont [2/16] %v271_v7, 128  ;;  %v969_v9 = vpop.trf.xlu0  ;;  %v349_v6 = vld [vmem:[#allocation2 + $0xa30] sm:$0xff]  ;;  %v348_v7 = vld [vmem:[#allocation2 + $0xa28] sm:$0xff] }
 0x254   :  { %1628 = vst [vmem:[#allocation5 + $0x528] sm:$0xff] %v1001_v8  ;;  %1755 = vst [vmem:[#allocation5 + $0x920] sm:$0xff] %v969_v9 }
 0x257   :  { %1113 = vxpose.xlu1.b32.cont [3/16] %v277_v10, 128  ;;  %v1002_v12 = vpop.trf.xlu1  ;;  %1081 = vxpose.xlu0.b32.cont [3/16] %v276_v11, 128  ;;  %v970_v13 = vpop.trf.xlu0  ;;  %v354_v10 = vld [vmem:[#allocation2 + $0xa58] sm:$0xff]  ;;  %v353_v11 = vld [vmem:[#allocation2 + $0xa50] sm:$0xff] }
 0x258   :  { %1630 = vst [vmem:[#allocation5 + $0x538] sm:$0xff] %v1002_v12  ;;  %1757 = vst [vmem:[#allocation5 + $0x930] sm:$0xff] %v970_v13 }
 0x25b   :  { %1114 = vxpose.xlu1.b32.cont [4/16] %v282_v14, 128  ;;  %v1003_v16 = vpop.trf.xlu1  ;;  %1082 = vxpose.xlu0.b32.cont [4/16] %v281_v15, 128  ;;  %v971_v17 = vpop.trf.xlu0  ;;  %v359_v14 = vld [vmem:[#allocation2 + $0xa80] sm:$0xff]  ;;  %v358_v15 = vld [vmem:[#allocation2 + $0xa78] sm:$0xff] }
 0x25c   :  { %1632 = vst [vmem:[#allocation5 + $0x548] sm:$0xff] %v1003_v16  ;;  %1759 = vst [vmem:[#allocation5 + $0x940] sm:$0xff] %v971_v17 }
 0x25f   :  { %1115 = vxpose.xlu1.b32.cont [5/16] %v287_v18, 128  ;;  %v1004_v20 = vpop.trf.xlu1  ;;  %1083 = vxpose.xlu0.b32.cont [5/16] %v286_v19, 128  ;;  %v972_v21 = vpop.trf.xlu0  ;;  %v364_v18 = vld [vmem:[#allocation2 + $0xaa8] sm:$0xff]  ;;  %v363_v19 = vld [vmem:[#allocation2 + $0xaa0] sm:$0xff] }
 0x260   :  { %1634 = vst [vmem:[#allocation5 + $0x558] sm:$0xff] %v1004_v20  ;;  %1761 = vst [vmem:[#allocation5 + $0x950] sm:$0xff] %v972_v21 }
 0x263   :  { %1116 = vxpose.xlu1.b32.cont [6/16] %v292_v22, 128  ;;  %v1005_v24 = vpop.trf.xlu1  ;;  %1084 = vxpose.xlu0.b32.cont [6/16] %v291_v23, 128  ;;  %v973_v25 = vpop.trf.xlu0  ;;  %v369_v22 = vld [vmem:[#allocation2 + $0xad0] sm:$0xff]  ;;  %v368_v23 = vld [vmem:[#allocation2 + $0xac8] sm:$0xff] }
 0x264   :  { %1636 = vst [vmem:[#allocation5 + $0x568] sm:$0xff] %v1005_v24  ;;  %1763 = vst [vmem:[#allocation5 + $0x960] sm:$0xff] %v973_v25 }
 0x267   :  { %1117 = vxpose.xlu1.b32.cont [7/16] %v297_v26, 128  ;;  %v1006_v28 = vpop.trf.xlu1  ;;  %1085 = vxpose.xlu0.b32.cont [7/16] %v296_v27, 128  ;;  %v974_v29 = vpop.trf.xlu0  ;;  %v374_v26 = vld [vmem:[#allocation2 + $0xaf8] sm:$0xff]  ;;  %v373_v27 = vld [vmem:[#allocation2 + $0xaf0] sm:$0xff] }
 0x268   :  { %1638 = vst [vmem:[#allocation5 + $0x578] sm:$0xff] %v1006_v28  ;;  %1765 = vst [vmem:[#allocation5 + $0x970] sm:$0xff] %v974_v29 }
 0x26b   :  { %1118 = vxpose.xlu1.b32.cont [8/16] %v302_v30, 128  ;;  %v1007_v32 = vpop.trf.xlu1  ;;  %1086 = vxpose.xlu0.b32.cont [8/16] %v301_v31, 128  ;;  %v975_v33 = vpop.trf.xlu0  ;;  %v379_v30 = vld [vmem:[#allocation2 + $0xb20] sm:$0xff]  ;;  %v378_v31 = vld [vmem:[#allocation2 + $0xb18] sm:$0xff] }
 0x26c   :  { %1640 = vst [vmem:[#allocation5 + $0x588] sm:$0xff] %v1007_v32  ;;  %1767 = vst [vmem:[#allocation5 + $0x980] sm:$0xff] %v975_v33 }
 0x26f   :  { %1119 = vxpose.xlu1.b32.cont [9/16] %v307_v34, 128  ;;  %v1008_v36 = vpop.trf.xlu1  ;;  %1087 = vxpose.xlu0.b32.cont [9/16] %v306_v35, 128  ;;  %v976_v37 = vpop.trf.xlu0  ;;  %v384_v34 = vld [vmem:[#allocation2 + $0xb48] sm:$0xff]  ;;  %v383_v35 = vld [vmem:[#allocation2 + $0xb40] sm:$0xff] }
 0x270   :  { %1642 = vst [vmem:[#allocation5 + $0x598] sm:$0xff] %v1008_v36  ;;  %1769 = vst [vmem:[#allocation5 + $0x990] sm:$0xff] %v976_v37 }
 0x273   :  { %1120 = vxpose.xlu1.b32.cont [10/16] %v312_v38, 128  ;;  %v1009_v40 = vpop.trf.xlu1  ;;  %1088 = vxpose.xlu0.b32.cont [10/16] %v311_v39, 128  ;;  %v977_v41 = vpop.trf.xlu0  ;;  %v389_v38 = vld [vmem:[#allocation2 + $0xb70] sm:$0xff]  ;;  %v388_v39 = vld [vmem:[#allocation2 + $0xb68] sm:$0xff] }
 0x274   :  { %1644 = vst [vmem:[#allocation5 + $0x5a8] sm:$0xff] %v1009_v40  ;;  %1771 = vst [vmem:[#allocation5 + $0x9a0] sm:$0xff] %v977_v41 }
 0x277   :  { %1121 = vxpose.xlu1.b32.cont [11/16] %v317_v42, 128  ;;  %v1010_v44 = vpop.trf.xlu1  ;;  %1089 = vxpose.xlu0.b32.cont [11/16] %v316_v43, 128  ;;  %v978_v45 = vpop.trf.xlu0  ;;  %v394_v42 = vld [vmem:[#allocation2 + $0xb98] sm:$0xff]  ;;  %v393_v43 = vld [vmem:[#allocation2 + $0xb90] sm:$0xff] }
 0x278   :  { %1646 = vst [vmem:[#allocation5 + $0x5b8] sm:$0xff] %v1010_v44  ;;  %1773 = vst [vmem:[#allocation5 + $0x9b0] sm:$0xff] %v978_v45 }
 0x27b   :  { %1122 = vxpose.xlu1.b32.cont [12/16] %v322_v46, 128  ;;  %v1011_v48 = vpop.trf.xlu1  ;;  %1090 = vxpose.xlu0.b32.cont [12/16] %v321_v47, 128  ;;  %v979_v49 = vpop.trf.xlu0  ;;  %v399_v46 = vld [vmem:[#allocation2 + $0xbc0] sm:$0xff]  ;;  %v398_v47 = vld [vmem:[#allocation2 + $0xbb8] sm:$0xff] }
 0x27c   :  { %1648 = vst [vmem:[#allocation5 + $0x5c8] sm:$0xff] %v1011_v48  ;;  %1775 = vst [vmem:[#allocation5 + $0x9c0] sm:$0xff] %v979_v49 }
 0x27f   :  { %1123 = vxpose.xlu1.b32.cont [13/16] %v327_v50, 128  ;;  %v1012_v52 = vpop.trf.xlu1  ;;  %1091 = vxpose.xlu0.b32.cont [13/16] %v326_v51, 128  ;;  %v980_v53 = vpop.trf.xlu0  ;;  %v404_v50 = vld [vmem:[#allocation2 + $0xbe8] sm:$0xff]  ;;  %v403_v51 = vld [vmem:[#allocation2 + $0xbe0] sm:$0xff] }
 0x280   :  { %1650 = vst [vmem:[#allocation5 + $0x5d8] sm:$0xff] %v1012_v52  ;;  %1777 = vst [vmem:[#allocation5 + $0x9d0] sm:$0xff] %v980_v53 }
 0x283   :  { %1124 = vxpose.xlu1.b32.cont [14/16] %v332_v54, 128  ;;  %v1013_v56 = vpop.trf.xlu1  ;;  %1092 = vxpose.xlu0.b32.cont [14/16] %v331_v55, 128  ;;  %v981_v57 = vpop.trf.xlu0  ;;  %v409_v54 = vld [vmem:[#allocation2 + $0xc10] sm:$0xff]  ;;  %v408_v55 = vld [vmem:[#allocation2 + $0xc08] sm:$0xff] }
 0x284   :  { %1652 = vst [vmem:[#allocation5 + $0x5e8] sm:$0xff] %v1013_v56  ;;  %1779 = vst [vmem:[#allocation5 + $0x9e0] sm:$0xff] %v981_v57 }
 0x287   :  { %1125 = vxpose.xlu1.b32.cont [15/16] %v337_v58, 128  ;;  %v1014_v60 = vpop.trf.xlu1  ;;  %1093 = vxpose.xlu0.b32.cont [15/16] %v336_v59, 128  ;;  %v982_v61 = vpop.trf.xlu0  ;;  %v414_v58 = vld [vmem:[#allocation2 + $0xc38] sm:$0xff]  ;;  %v413_v59 = vld [vmem:[#allocation2 + $0xc30] sm:$0xff] }
 0x288   :  { %1654 = vst [vmem:[#allocation5 + $0x5f8] sm:$0xff] %v1014_v60  ;;  %1781 = vst [vmem:[#allocation5 + $0x9f0] sm:$0xff] %v982_v61 }
 0x28b   :  { %1126 = vxpose.xlu1.b32.end [16/16] %v342_v62, 128  ;;  %v1063_v0 = vpop.trf.xlu1  ;;  %1094 = vxpose.xlu0.b32.end [16/16] %v341_v63, 128  ;;  %v1031_v1 = vpop.trf.xlu0  ;;  %v419_v62 = vld [vmem:[#allocation2 + $0xc60] sm:$0xff]  ;;  %v418_v63 = vld [vmem:[#allocation2 + $0xc58] sm:$0xff] }
 0x28c   :  { %1688 = vst [vmem:[#allocation5 + $0x708] sm:$0xff] %v1063_v0  ;;  %1656 = vst [vmem:[#allocation5 + $0x608] sm:$0xff] %v1031_v1 }
 0x28f   :  { %1175 = vxpose.xlu1.b32.start [1/16] %v344_v2, 128  ;;  %v1064_v4 = vpop.trf.xlu1  ;;  %1143 = vxpose.xlu0.b32.start [1/16] %v343_v3, 128  ;;  %v1032_v5 = vpop.trf.xlu0  ;;  %v346_v2 = vld [vmem:[#allocation2 + $0xa18] sm:$0xff]  ;;  %v345_v3 = vld [vmem:[#allocation2 + $0xa10] sm:$0xff] }
 0x290   :  { %1690 = vst [vmem:[#allocation5 + $0x718] sm:$0xff] %v1064_v4  ;;  %1658 = vst [vmem:[#allocation5 + $0x618] sm:$0xff] %v1032_v5 }
 0x293   :  { %1176 = vxpose.xlu1.b32.cont [2/16] %v349_v6, 128  ;;  %v1065_v8 = vpop.trf.xlu1  ;;  %1144 = vxpose.xlu0.b32.cont [2/16] %v348_v7, 128  ;;  %v1033_v9 = vpop.trf.xlu0  ;;  %v351_v6 = vld [vmem:[#allocation2 + $0xa40] sm:$0xff]  ;;  %v350_v7 = vld [vmem:[#allocation2 + $0xa38] sm:$0xff] }
 0x294   :  { %1692 = vst [vmem:[#allocation5 + $0x728] sm:$0xff] %v1065_v8  ;;  %1660 = vst [vmem:[#allocation5 + $0x628] sm:$0xff] %v1033_v9 }
 0x297   :  { %1177 = vxpose.xlu1.b32.cont [3/16] %v354_v10, 128  ;;  %v1066_v12 = vpop.trf.xlu1  ;;  %1145 = vxpose.xlu0.b32.cont [3/16] %v353_v11, 128  ;;  %v1034_v13 = vpop.trf.xlu0  ;;  %v356_v10 = vld [vmem:[#allocation2 + $0xa68] sm:$0xff]  ;;  %v355_v11 = vld [vmem:[#allocation2 + $0xa60] sm:$0xff] }
 0x298   :  { %1694 = vst [vmem:[#allocation5 + $0x738] sm:$0xff] %v1066_v12  ;;  %1662 = vst [vmem:[#allocation5 + $0x638] sm:$0xff] %v1034_v13 }
 0x29b   :  { %1178 = vxpose.xlu1.b32.cont [4/16] %v359_v14, 128  ;;  %v1067_v16 = vpop.trf.xlu1  ;;  %1146 = vxpose.xlu0.b32.cont [4/16] %v358_v15, 128  ;;  %v1035_v17 = vpop.trf.xlu0  ;;  %v361_v14 = vld [vmem:[#allocation2 + $0xa90] sm:$0xff]  ;;  %v360_v15 = vld [vmem:[#allocation2 + $0xa88] sm:$0xff] }
 0x29c   :  { %1696 = vst [vmem:[#allocation5 + $0x748] sm:$0xff] %v1067_v16  ;;  %1664 = vst [vmem:[#allocation5 + $0x648] sm:$0xff] %v1035_v17 }
 0x29f   :  { %1179 = vxpose.xlu1.b32.cont [5/16] %v364_v18, 128  ;;  %v1068_v20 = vpop.trf.xlu1  ;;  %1147 = vxpose.xlu0.b32.cont [5/16] %v363_v19, 128  ;;  %v1036_v21 = vpop.trf.xlu0  ;;  %v366_v18 = vld [vmem:[#allocation2 + $0xab8] sm:$0xff]  ;;  %v365_v19 = vld [vmem:[#allocation2 + $0xab0] sm:$0xff] }
 0x2a0   :  { %1698 = vst [vmem:[#allocation5 + $0x758] sm:$0xff] %v1068_v20  ;;  %1666 = vst [vmem:[#allocation5 + $0x658] sm:$0xff] %v1036_v21 }
 0x2a3   :  { %1180 = vxpose.xlu1.b32.cont [6/16] %v369_v22, 128  ;;  %v1069_v24 = vpop.trf.xlu1  ;;  %1148 = vxpose.xlu0.b32.cont [6/16] %v368_v23, 128  ;;  %v1037_v25 = vpop.trf.xlu0  ;;  %v371_v22 = vld [vmem:[#allocation2 + $0xae0] sm:$0xff]  ;;  %v370_v23 = vld [vmem:[#allocation2 + $0xad8] sm:$0xff] }
 0x2a4   :  { %1700 = vst [vmem:[#allocation5 + $0x768] sm:$0xff] %v1069_v24  ;;  %1668 = vst [vmem:[#allocation5 + $0x668] sm:$0xff] %v1037_v25 }
 0x2a7   :  { %1181 = vxpose.xlu1.b32.cont [7/16] %v374_v26, 128  ;;  %v1070_v28 = vpop.trf.xlu1  ;;  %1149 = vxpose.xlu0.b32.cont [7/16] %v373_v27, 128  ;;  %v1038_v29 = vpop.trf.xlu0  ;;  %v376_v26 = vld [vmem:[#allocation2 + $0xb08] sm:$0xff]  ;;  %v375_v27 = vld [vmem:[#allocation2 + $0xb00] sm:$0xff] }
 0x2a8   :  { %1702 = vst [vmem:[#allocation5 + $0x778] sm:$0xff] %v1070_v28  ;;  %1670 = vst [vmem:[#allocation5 + $0x678] sm:$0xff] %v1038_v29 }
 0x2ab   :  { %1182 = vxpose.xlu1.b32.cont [8/16] %v379_v30, 128  ;;  %v1071_v32 = vpop.trf.xlu1  ;;  %1150 = vxpose.xlu0.b32.cont [8/16] %v378_v31, 128  ;;  %v1039_v33 = vpop.trf.xlu0  ;;  %v381_v30 = vld [vmem:[#allocation2 + $0xb30] sm:$0xff]  ;;  %v380_v31 = vld [vmem:[#allocation2 + $0xb28] sm:$0xff] }
 0x2ac   :  { %1704 = vst [vmem:[#allocation5 + $0x788] sm:$0xff] %v1071_v32  ;;  %1672 = vst [vmem:[#allocation5 + $0x688] sm:$0xff] %v1039_v33 }
 0x2af   :  { %1183 = vxpose.xlu1.b32.cont [9/16] %v384_v34, 128  ;;  %v1072_v36 = vpop.trf.xlu1  ;;  %1151 = vxpose.xlu0.b32.cont [9/16] %v383_v35, 128  ;;  %v1040_v37 = vpop.trf.xlu0  ;;  %v386_v34 = vld [vmem:[#allocation2 + $0xb58] sm:$0xff]  ;;  %v385_v35 = vld [vmem:[#allocation2 + $0xb50] sm:$0xff] }
 0x2b0   :  { %1706 = vst [vmem:[#allocation5 + $0x798] sm:$0xff] %v1072_v36  ;;  %1674 = vst [vmem:[#allocation5 + $0x698] sm:$0xff] %v1040_v37 }
 0x2b3   :  { %1184 = vxpose.xlu1.b32.cont [10/16] %v389_v38, 128  ;;  %v1073_v40 = vpop.trf.xlu1  ;;  %1152 = vxpose.xlu0.b32.cont [10/16] %v388_v39, 128  ;;  %v1041_v41 = vpop.trf.xlu0  ;;  %v391_v38 = vld [vmem:[#allocation2 + $0xb80] sm:$0xff]  ;;  %v390_v39 = vld [vmem:[#allocation2 + $0xb78] sm:$0xff] }
 0x2b4   :  { %1708 = vst [vmem:[#allocation5 + $0x7a8] sm:$0xff] %v1073_v40  ;;  %1676 = vst [vmem:[#allocation5 + $0x6a8] sm:$0xff] %v1041_v41 }
 0x2b7   :  { %1185 = vxpose.xlu1.b32.cont [11/16] %v394_v42, 128  ;;  %v1074_v44 = vpop.trf.xlu1  ;;  %1153 = vxpose.xlu0.b32.cont [11/16] %v393_v43, 128  ;;  %v1042_v45 = vpop.trf.xlu0  ;;  %v396_v42 = vld [vmem:[#allocation2 + $0xba8] sm:$0xff]  ;;  %v395_v43 = vld [vmem:[#allocation2 + $0xba0] sm:$0xff] }
 0x2b8   :  { %1710 = vst [vmem:[#allocation5 + $0x7b8] sm:$0xff] %v1074_v44  ;;  %1678 = vst [vmem:[#allocation5 + $0x6b8] sm:$0xff] %v1042_v45 }
 0x2bb   :  { %1186 = vxpose.xlu1.b32.cont [12/16] %v399_v46, 128  ;;  %v1075_v48 = vpop.trf.xlu1  ;;  %1154 = vxpose.xlu0.b32.cont [12/16] %v398_v47, 128  ;;  %v1043_v49 = vpop.trf.xlu0  ;;  %v401_v46 = vld [vmem:[#allocation2 + $0xbd0] sm:$0xff]  ;;  %v400_v47 = vld [vmem:[#allocation2 + $0xbc8] sm:$0xff] }
 0x2bc   :  { %1712 = vst [vmem:[#allocation5 + $0x7c8] sm:$0xff] %v1075_v48  ;;  %1680 = vst [vmem:[#allocation5 + $0x6c8] sm:$0xff] %v1043_v49 }
 0x2bf   :  { %1187 = vxpose.xlu1.b32.cont [13/16] %v404_v50, 128  ;;  %v1076_v52 = vpop.trf.xlu1  ;;  %1155 = vxpose.xlu0.b32.cont [13/16] %v403_v51, 128  ;;  %v1044_v53 = vpop.trf.xlu0  ;;  %v406_v50 = vld [vmem:[#allocation2 + $0xbf8] sm:$0xff]  ;;  %v405_v51 = vld [vmem:[#allocation2 + $0xbf0] sm:$0xff] }
 0x2c0   :  { %1714 = vst [vmem:[#allocation5 + $0x7d8] sm:$0xff] %v1076_v52  ;;  %1682 = vst [vmem:[#allocation5 + $0x6d8] sm:$0xff] %v1044_v53 }
 0x2c3   :  { %1188 = vxpose.xlu1.b32.cont [14/16] %v409_v54, 128  ;;  %v1077_v56 = vpop.trf.xlu1  ;;  %1156 = vxpose.xlu0.b32.cont [14/16] %v408_v55, 128  ;;  %v1045_v57 = vpop.trf.xlu0  ;;  %v411_v54 = vld [vmem:[#allocation2 + $0xc20] sm:$0xff]  ;;  %v410_v55 = vld [vmem:[#allocation2 + $0xc18] sm:$0xff] }
 0x2c4   :  { %1716 = vst [vmem:[#allocation5 + $0x7e8] sm:$0xff] %v1077_v56  ;;  %1684 = vst [vmem:[#allocation5 + $0x6e8] sm:$0xff] %v1045_v57 }
 0x2c7   :  { %1189 = vxpose.xlu1.b32.cont [15/16] %v414_v58, 128  ;;  %v1078_v60 = vpop.trf.xlu1  ;;  %1157 = vxpose.xlu0.b32.cont [15/16] %v413_v59, 128  ;;  %v1046_v61 = vpop.trf.xlu0  ;;  %v416_v58 = vld [vmem:[#allocation2 + $0xc48] sm:$0xff]  ;;  %v415_v59 = vld [vmem:[#allocation2 + $0xc40] sm:$0xff] }
 0x2c8   :  { %1718 = vst [vmem:[#allocation5 + $0x7f8] sm:$0xff] %v1078_v60  ;;  %1686 = vst [vmem:[#allocation5 + $0x6f8] sm:$0xff] %v1046_v61 }
 0x2cb   :  { %1190 = vxpose.xlu1.b32.end [16/16] %v419_v62, 128  ;;  %v1127_v0 = vpop.trf.xlu1  ;;  %1158 = vxpose.xlu0.b32.end [16/16] %v418_v63, 128  ;;  %v1095_v1 = vpop.trf.xlu0  ;;  %v421_v62 = vld [vmem:[#allocation2 + $0xc70] sm:$0xff]  ;;  %v420_v63 = vld [vmem:[#allocation2 + $0xc68] sm:$0xff] }
 0x2cc   :  { %1752 = vst [vmem:[#allocation5 + $0x908] sm:$0xff] %v1127_v0  ;;  %1720 = vst [vmem:[#allocation5 + $0x808] sm:$0xff] %v1095_v1 }
 0x2cf   :  { %1239 = vxpose.xlu1.b32.start [1/16] %v346_v2, 128  ;;  %v1128_v4 = vpop.trf.xlu1  ;;  %1207 = vxpose.xlu0.b32.start [1/16] %v345_v3, 128  ;;  %v1096_v5 = vpop.trf.xlu0  ;;  %v423_v2 = vld [vmem:[#allocation2 + $0xc80] sm:$0xff] }
 0x2d0   :  { %1754 = vst [vmem:[#allocation5 + $0x918] sm:$0xff] %v1128_v4  ;;  %1722 = vst [vmem:[#allocation5 + $0x818] sm:$0xff] %v1096_v5  ;;  %v347_v3 = vld [vmem:[#allocation2 + $0xa20] sm:$0xff] }
 0x2d3   :  { %1240 = vxpose.xlu1.b32.cont [2/16] %v351_v6, 128  ;;  %v1129_v8 = vpop.trf.xlu1  ;;  %1208 = vxpose.xlu0.b32.cont [2/16] %v350_v7, 128  ;;  %v1097_v9 = vpop.trf.xlu0  ;;  %v428_v6 = vld [vmem:[#allocation2 + $0xca8] sm:$0xff] }
 0x2d4   :  { %1756 = vst [vmem:[#allocation5 + $0x928] sm:$0xff] %v1129_v8  ;;  %1724 = vst [vmem:[#allocation5 + $0x828] sm:$0xff] %v1097_v9  ;;  %v352_v7 = vld [vmem:[#allocation2 + $0xa48] sm:$0xff] }
 0x2d7   :  { %1241 = vxpose.xlu1.b32.cont [3/16] %v356_v10, 128  ;;  %v1130_v12 = vpop.trf.xlu1  ;;  %1209 = vxpose.xlu0.b32.cont [3/16] %v355_v11, 128  ;;  %v1098_v13 = vpop.trf.xlu0  ;;  %v433_v10 = vld [vmem:[#allocation2 + $0xcd0] sm:$0xff] }
 0x2d8   :  { %1758 = vst [vmem:[#allocation5 + $0x938] sm:$0xff] %v1130_v12  ;;  %1726 = vst [vmem:[#allocation5 + $0x838] sm:$0xff] %v1098_v13  ;;  %v357_v11 = vld [vmem:[#allocation2 + $0xa70] sm:$0xff] }
 0x2db   :  { %1242 = vxpose.xlu1.b32.cont [4/16] %v361_v14, 128  ;;  %v1131_v16 = vpop.trf.xlu1  ;;  %1210 = vxpose.xlu0.b32.cont [4/16] %v360_v15, 128  ;;  %v1099_v17 = vpop.trf.xlu0  ;;  %v438_v14 = vld [vmem:[#allocation2 + $0xcf8] sm:$0xff] }
 0x2dc   :  { %1760 = vst [vmem:[#allocation5 + $0x948] sm:$0xff] %v1131_v16  ;;  %1728 = vst [vmem:[#allocation5 + $0x848] sm:$0xff] %v1099_v17  ;;  %v362_v15 = vld [vmem:[#allocation2 + $0xa98] sm:$0xff] }
 0x2df   :  { %1243 = vxpose.xlu1.b32.cont [5/16] %v366_v18, 128  ;;  %v1132_v20 = vpop.trf.xlu1  ;;  %1211 = vxpose.xlu0.b32.cont [5/16] %v365_v19, 128  ;;  %v1100_v21 = vpop.trf.xlu0  ;;  %v443_v18 = vld [vmem:[#allocation2 + $0xd20] sm:$0xff] }
 0x2e0   :  { %1762 = vst [vmem:[#allocation5 + $0x958] sm:$0xff] %v1132_v20  ;;  %1730 = vst [vmem:[#allocation5 + $0x858] sm:$0xff] %v1100_v21  ;;  %v367_v19 = vld [vmem:[#allocation2 + $0xac0] sm:$0xff] }
 0x2e3   :  { %1244 = vxpose.xlu1.b32.cont [6/16] %v371_v22, 128  ;;  %v1133_v24 = vpop.trf.xlu1  ;;  %1212 = vxpose.xlu0.b32.cont [6/16] %v370_v23, 128  ;;  %v1101_v25 = vpop.trf.xlu0  ;;  %v448_v22 = vld [vmem:[#allocation2 + $0xd48] sm:$0xff] }
 0x2e4   :  { %1764 = vst [vmem:[#allocation5 + $0x968] sm:$0xff] %v1133_v24  ;;  %1732 = vst [vmem:[#allocation5 + $0x868] sm:$0xff] %v1101_v25  ;;  %v372_v23 = vld [vmem:[#allocation2 + $0xae8] sm:$0xff] }
 0x2e7   :  { %1245 = vxpose.xlu1.b32.cont [7/16] %v376_v26, 128  ;;  %v1134_v28 = vpop.trf.xlu1  ;;  %1213 = vxpose.xlu0.b32.cont [7/16] %v375_v27, 128  ;;  %v1102_v29 = vpop.trf.xlu0  ;;  %v453_v26 = vld [vmem:[#allocation2 + $0xd70] sm:$0xff] }
 0x2e8   :  { %1766 = vst [vmem:[#allocation5 + $0x978] sm:$0xff] %v1134_v28  ;;  %1734 = vst [vmem:[#allocation5 + $0x878] sm:$0xff] %v1102_v29  ;;  %v377_v27 = vld [vmem:[#allocation2 + $0xb10] sm:$0xff] }
 0x2eb   :  { %1246 = vxpose.xlu1.b32.cont [8/16] %v381_v30, 128  ;;  %v1135_v32 = vpop.trf.xlu1  ;;  %1214 = vxpose.xlu0.b32.cont [8/16] %v380_v31, 128  ;;  %v1103_v33 = vpop.trf.xlu0  ;;  %v458_v30 = vld [vmem:[#allocation2 + $0xd98] sm:$0xff] }
 0x2ec   :  { %1768 = vst [vmem:[#allocation5 + $0x988] sm:$0xff] %v1135_v32  ;;  %1736 = vst [vmem:[#allocation5 + $0x888] sm:$0xff] %v1103_v33  ;;  %v382_v31 = vld [vmem:[#allocation2 + $0xb38] sm:$0xff] }
 0x2ef   :  { %1247 = vxpose.xlu1.b32.cont [9/16] %v386_v34, 128  ;;  %v1136_v36 = vpop.trf.xlu1  ;;  %1215 = vxpose.xlu0.b32.cont [9/16] %v385_v35, 128  ;;  %v1104_v37 = vpop.trf.xlu0  ;;  %v463_v34 = vld [vmem:[#allocation2 + $0xdc0] sm:$0xff] }
 0x2f0   :  { %1770 = vst [vmem:[#allocation5 + $0x998] sm:$0xff] %v1136_v36  ;;  %1738 = vst [vmem:[#allocation5 + $0x898] sm:$0xff] %v1104_v37  ;;  %v387_v35 = vld [vmem:[#allocation2 + $0xb60] sm:$0xff] }
 0x2f3   :  { %1248 = vxpose.xlu1.b32.cont [10/16] %v391_v38, 128  ;;  %v1137_v40 = vpop.trf.xlu1  ;;  %1216 = vxpose.xlu0.b32.cont [10/16] %v390_v39, 128  ;;  %v1105_v41 = vpop.trf.xlu0  ;;  %v468_v38 = vld [vmem:[#allocation2 + $0xde8] sm:$0xff] }
 0x2f4   :  { %1772 = vst [vmem:[#allocation5 + $0x9a8] sm:$0xff] %v1137_v40  ;;  %1740 = vst [vmem:[#allocation5 + $0x8a8] sm:$0xff] %v1105_v41  ;;  %v392_v39 = vld [vmem:[#allocation2 + $0xb88] sm:$0xff] }
 0x2f7   :  { %1249 = vxpose.xlu1.b32.cont [11/16] %v396_v42, 128  ;;  %v1138_v44 = vpop.trf.xlu1  ;;  %1217 = vxpose.xlu0.b32.cont [11/16] %v395_v43, 128  ;;  %v1106_v45 = vpop.trf.xlu0  ;;  %v473_v42 = vld [vmem:[#allocation2 + $0xe10] sm:$0xff] }
 0x2f8   :  { %1774 = vst [vmem:[#allocation5 + $0x9b8] sm:$0xff] %v1138_v44  ;;  %1742 = vst [vmem:[#allocation5 + $0x8b8] sm:$0xff] %v1106_v45  ;;  %v397_v43 = vld [vmem:[#allocation2 + $0xbb0] sm:$0xff] }
 0x2fb   :  { %1250 = vxpose.xlu1.b32.cont [12/16] %v401_v46, 128  ;;  %v1139_v48 = vpop.trf.xlu1  ;;  %1218 = vxpose.xlu0.b32.cont [12/16] %v400_v47, 128  ;;  %v1107_v49 = vpop.trf.xlu0  ;;  %v478_v46 = vld [vmem:[#allocation2 + $0xe38] sm:$0xff] }
 0x2fc   :  { %1776 = vst [vmem:[#allocation5 + $0x9c8] sm:$0xff] %v1139_v48  ;;  %1744 = vst [vmem:[#allocation5 + $0x8c8] sm:$0xff] %v1107_v49  ;;  %v402_v47 = vld [vmem:[#allocation2 + $0xbd8] sm:$0xff] }
 0x2ff   :  { %1251 = vxpose.xlu1.b32.cont [13/16] %v406_v50, 128  ;;  %v1140_v52 = vpop.trf.xlu1  ;;  %1219 = vxpose.xlu0.b32.cont [13/16] %v405_v51, 128  ;;  %v1108_v53 = vpop.trf.xlu0  ;;  %v483_v50 = vld [vmem:[#allocation2 + $0xe60] sm:$0xff] }
 0x300   :  { %1778 = vst [vmem:[#allocation5 + $0x9d8] sm:$0xff] %v1140_v52  ;;  %1746 = vst [vmem:[#allocation5 + $0x8d8] sm:$0xff] %v1108_v53  ;;  %v407_v51 = vld [vmem:[#allocation2 + $0xc00] sm:$0xff] }
 0x303   :  { %1252 = vxpose.xlu1.b32.cont [14/16] %v411_v54, 128  ;;  %v1141_v56 = vpop.trf.xlu1  ;;  %1220 = vxpose.xlu0.b32.cont [14/16] %v410_v55, 128  ;;  %v1109_v57 = vpop.trf.xlu0  ;;  %v488_v54 = vld [vmem:[#allocation2 + $0xe88] sm:$0xff] }
 0x304   :  { %1780 = vst [vmem:[#allocation5 + $0x9e8] sm:$0xff] %v1141_v56  ;;  %1748 = vst [vmem:[#allocation5 + $0x8e8] sm:$0xff] %v1109_v57  ;;  %v412_v55 = vld [vmem:[#allocation2 + $0xc28] sm:$0xff] }
 0x307   :  { %1253 = vxpose.xlu1.b32.cont [15/16] %v416_v58, 128  ;;  %v1142_v60 = vpop.trf.xlu1  ;;  %1221 = vxpose.xlu0.b32.cont [15/16] %v415_v59, 128  ;;  %v1110_v61 = vpop.trf.xlu0  ;;  %v493_v58 = vld [vmem:[#allocation2 + $0xeb0] sm:$0xff] }
 0x308   :  { %1782 = vst [vmem:[#allocation5 + $0x9f8] sm:$0xff] %v1142_v60  ;;  %1750 = vst [vmem:[#allocation5 + $0x8f8] sm:$0xff] %v1110_v61  ;;  %v417_v59 = vld [vmem:[#allocation2 + $0xc50] sm:$0xff] }
 0x30b   :  { %1254 = vxpose.xlu1.b32.end [16/16] %v421_v62, 128  ;;  %v1191_v0 = vpop.trf.xlu1  ;;  %1222 = vxpose.xlu0.b32.end [16/16] %v420_v63, 128  ;;  %v1159_v1 = vpop.trf.xlu0  ;;  %v498_v62 = vld [vmem:[#allocation2 + $0xed8] sm:$0xff] }
 0x30c   :  { %1815 = vst [vmem:[#allocation5 + $0xb00] sm:$0xff] %v1191_v0  ;;  %1783 = vst [vmem:[#allocation5 + $0xa00] sm:$0xff] %v1159_v1  ;;  %v422_v63 = vld [vmem:[#allocation2 + $0xc78] sm:$0xff] }
 0x30f   :  { %1303 = vxpose.xlu1.b32.start [1/16] %v423_v2, 128  ;;  %v1192_v4 = vpop.trf.xlu1  ;;  %1271 = vxpose.xlu0.b32.start [1/16] %v347_v3, 128  ;;  %v1160_v5 = vpop.trf.xlu0  ;;  %v425_v2 = vld [vmem:[#allocation2 + $0xc90] sm:$0xff]  ;;  %v424_v3 = vld [vmem:[#allocation2 + $0xc88] sm:$0xff] }
 0x310   :  { %1817 = vst [vmem:[#allocation5 + $0xb10] sm:$0xff] %v1192_v4  ;;  %1785 = vst [vmem:[#allocation5 + $0xa10] sm:$0xff] %v1160_v5 }
 0x313   :  { %1304 = vxpose.xlu1.b32.cont [2/16] %v428_v6, 128  ;;  %v1193_v8 = vpop.trf.xlu1  ;;  %1272 = vxpose.xlu0.b32.cont [2/16] %v352_v7, 128  ;;  %v1161_v9 = vpop.trf.xlu0  ;;  %v430_v6 = vld [vmem:[#allocation2 + $0xcb8] sm:$0xff]  ;;  %v429_v7 = vld [vmem:[#allocation2 + $0xcb0] sm:$0xff] }
 0x314   :  { %1819 = vst [vmem:[#allocation5 + $0xb20] sm:$0xff] %v1193_v8  ;;  %1787 = vst [vmem:[#allocation5 + $0xa20] sm:$0xff] %v1161_v9 }
 0x317   :  { %1305 = vxpose.xlu1.b32.cont [3/16] %v433_v10, 128  ;;  %v1194_v12 = vpop.trf.xlu1  ;;  %1273 = vxpose.xlu0.b32.cont [3/16] %v357_v11, 128  ;;  %v1162_v13 = vpop.trf.xlu0  ;;  %v435_v10 = vld [vmem:[#allocation2 + $0xce0] sm:$0xff]  ;;  %v434_v11 = vld [vmem:[#allocation2 + $0xcd8] sm:$0xff] }
 0x318   :  { %1821 = vst [vmem:[#allocation5 + $0xb30] sm:$0xff] %v1194_v12  ;;  %1789 = vst [vmem:[#allocation5 + $0xa30] sm:$0xff] %v1162_v13 }
 0x31b   :  { %1306 = vxpose.xlu1.b32.cont [4/16] %v438_v14, 128  ;;  %v1195_v16 = vpop.trf.xlu1  ;;  %1274 = vxpose.xlu0.b32.cont [4/16] %v362_v15, 128  ;;  %v1163_v17 = vpop.trf.xlu0  ;;  %v440_v14 = vld [vmem:[#allocation2 + $0xd08] sm:$0xff]  ;;  %v439_v15 = vld [vmem:[#allocation2 + $0xd00] sm:$0xff] }
 0x31c   :  { %1823 = vst [vmem:[#allocation5 + $0xb40] sm:$0xff] %v1195_v16  ;;  %1791 = vst [vmem:[#allocation5 + $0xa40] sm:$0xff] %v1163_v17 }
 0x31f   :  { %1307 = vxpose.xlu1.b32.cont [5/16] %v443_v18, 128  ;;  %v1196_v20 = vpop.trf.xlu1  ;;  %1275 = vxpose.xlu0.b32.cont [5/16] %v367_v19, 128  ;;  %v1164_v21 = vpop.trf.xlu0  ;;  %v445_v18 = vld [vmem:[#allocation2 + $0xd30] sm:$0xff]  ;;  %v444_v19 = vld [vmem:[#allocation2 + $0xd28] sm:$0xff] }
 0x320   :  { %1825 = vst [vmem:[#allocation5 + $0xb50] sm:$0xff] %v1196_v20  ;;  %1793 = vst [vmem:[#allocation5 + $0xa50] sm:$0xff] %v1164_v21 }
 0x323   :  { %1308 = vxpose.xlu1.b32.cont [6/16] %v448_v22, 128  ;;  %v1197_v24 = vpop.trf.xlu1  ;;  %1276 = vxpose.xlu0.b32.cont [6/16] %v372_v23, 128  ;;  %v1165_v25 = vpop.trf.xlu0  ;;  %v450_v22 = vld [vmem:[#allocation2 + $0xd58] sm:$0xff]  ;;  %v449_v23 = vld [vmem:[#allocation2 + $0xd50] sm:$0xff] }
 0x324   :  { %1827 = vst [vmem:[#allocation5 + $0xb60] sm:$0xff] %v1197_v24  ;;  %1795 = vst [vmem:[#allocation5 + $0xa60] sm:$0xff] %v1165_v25 }
 0x327   :  { %1309 = vxpose.xlu1.b32.cont [7/16] %v453_v26, 128  ;;  %v1198_v28 = vpop.trf.xlu1  ;;  %1277 = vxpose.xlu0.b32.cont [7/16] %v377_v27, 128  ;;  %v1166_v29 = vpop.trf.xlu0  ;;  %v455_v26 = vld [vmem:[#allocation2 + $0xd80] sm:$0xff]  ;;  %v454_v27 = vld [vmem:[#allocation2 + $0xd78] sm:$0xff] }
 0x328   :  { %1829 = vst [vmem:[#allocation5 + $0xb70] sm:$0xff] %v1198_v28  ;;  %1797 = vst [vmem:[#allocation5 + $0xa70] sm:$0xff] %v1166_v29 }
 0x32b   :  { %1310 = vxpose.xlu1.b32.cont [8/16] %v458_v30, 128  ;;  %v1199_v32 = vpop.trf.xlu1  ;;  %1278 = vxpose.xlu0.b32.cont [8/16] %v382_v31, 128  ;;  %v1167_v33 = vpop.trf.xlu0  ;;  %v460_v30 = vld [vmem:[#allocation2 + $0xda8] sm:$0xff]  ;;  %v459_v31 = vld [vmem:[#allocation2 + $0xda0] sm:$0xff] }
 0x32c   :  { %1831 = vst [vmem:[#allocation5 + $0xb80] sm:$0xff] %v1199_v32  ;;  %1799 = vst [vmem:[#allocation5 + $0xa80] sm:$0xff] %v1167_v33 }
 0x32f   :  { %1311 = vxpose.xlu1.b32.cont [9/16] %v463_v34, 128  ;;  %v1200_v36 = vpop.trf.xlu1  ;;  %1279 = vxpose.xlu0.b32.cont [9/16] %v387_v35, 128  ;;  %v1168_v37 = vpop.trf.xlu0  ;;  %v465_v34 = vld [vmem:[#allocation2 + $0xdd0] sm:$0xff]  ;;  %v464_v35 = vld [vmem:[#allocation2 + $0xdc8] sm:$0xff] }
 0x330   :  { %1833 = vst [vmem:[#allocation5 + $0xb90] sm:$0xff] %v1200_v36  ;;  %1801 = vst [vmem:[#allocation5 + $0xa90] sm:$0xff] %v1168_v37 }
 0x333   :  { %1312 = vxpose.xlu1.b32.cont [10/16] %v468_v38, 128  ;;  %v1201_v40 = vpop.trf.xlu1  ;;  %1280 = vxpose.xlu0.b32.cont [10/16] %v392_v39, 128  ;;  %v1169_v41 = vpop.trf.xlu0  ;;  %v470_v38 = vld [vmem:[#allocation2 + $0xdf8] sm:$0xff]  ;;  %v469_v39 = vld [vmem:[#allocation2 + $0xdf0] sm:$0xff] }
 0x334   :  { %1835 = vst [vmem:[#allocation5 + $0xba0] sm:$0xff] %v1201_v40  ;;  %1803 = vst [vmem:[#allocation5 + $0xaa0] sm:$0xff] %v1169_v41 }
 0x337   :  { %1313 = vxpose.xlu1.b32.cont [11/16] %v473_v42, 128  ;;  %v1202_v44 = vpop.trf.xlu1  ;;  %1281 = vxpose.xlu0.b32.cont [11/16] %v397_v43, 128  ;;  %v1170_v45 = vpop.trf.xlu0  ;;  %v475_v42 = vld [vmem:[#allocation2 + $0xe20] sm:$0xff]  ;;  %v474_v43 = vld [vmem:[#allocation2 + $0xe18] sm:$0xff] }
 0x338   :  { %1837 = vst [vmem:[#allocation5 + $0xbb0] sm:$0xff] %v1202_v44  ;;  %1805 = vst [vmem:[#allocation5 + $0xab0] sm:$0xff] %v1170_v45 }
 0x33b   :  { %1314 = vxpose.xlu1.b32.cont [12/16] %v478_v46, 128  ;;  %v1203_v48 = vpop.trf.xlu1  ;;  %1282 = vxpose.xlu0.b32.cont [12/16] %v402_v47, 128  ;;  %v1171_v49 = vpop.trf.xlu0  ;;  %v480_v46 = vld [vmem:[#allocation2 + $0xe48] sm:$0xff]  ;;  %v479_v47 = vld [vmem:[#allocation2 + $0xe40] sm:$0xff] }
 0x33c   :  { %1839 = vst [vmem:[#allocation5 + $0xbc0] sm:$0xff] %v1203_v48  ;;  %1807 = vst [vmem:[#allocation5 + $0xac0] sm:$0xff] %v1171_v49 }
 0x33f   :  { %1315 = vxpose.xlu1.b32.cont [13/16] %v483_v50, 128  ;;  %v1204_v52 = vpop.trf.xlu1  ;;  %1283 = vxpose.xlu0.b32.cont [13/16] %v407_v51, 128  ;;  %v1172_v53 = vpop.trf.xlu0  ;;  %v485_v50 = vld [vmem:[#allocation2 + $0xe70] sm:$0xff]  ;;  %v484_v51 = vld [vmem:[#allocation2 + $0xe68] sm:$0xff] }
 0x340   :  { %1841 = vst [vmem:[#allocation5 + $0xbd0] sm:$0xff] %v1204_v52  ;;  %1809 = vst [vmem:[#allocation5 + $0xad0] sm:$0xff] %v1172_v53 }
 0x343   :  { %1316 = vxpose.xlu1.b32.cont [14/16] %v488_v54, 128  ;;  %v1205_v56 = vpop.trf.xlu1  ;;  %1284 = vxpose.xlu0.b32.cont [14/16] %v412_v55, 128  ;;  %v1173_v57 = vpop.trf.xlu0  ;;  %v490_v54 = vld [vmem:[#allocation2 + $0xe98] sm:$0xff]  ;;  %v489_v55 = vld [vmem:[#allocation2 + $0xe90] sm:$0xff] }
 0x344   :  { %1843 = vst [vmem:[#allocation5 + $0xbe0] sm:$0xff] %v1205_v56  ;;  %1811 = vst [vmem:[#allocation5 + $0xae0] sm:$0xff] %v1173_v57 }
 0x347   :  { %1317 = vxpose.xlu1.b32.cont [15/16] %v493_v58, 128  ;;  %v1206_v60 = vpop.trf.xlu1  ;;  %1285 = vxpose.xlu0.b32.cont [15/16] %v417_v59, 128  ;;  %v1174_v61 = vpop.trf.xlu0  ;;  %v495_v58 = vld [vmem:[#allocation2 + $0xec0] sm:$0xff]  ;;  %v494_v59 = vld [vmem:[#allocation2 + $0xeb8] sm:$0xff] }
 0x348   :  { %1845 = vst [vmem:[#allocation5 + $0xbf0] sm:$0xff] %v1206_v60  ;;  %1813 = vst [vmem:[#allocation5 + $0xaf0] sm:$0xff] %v1174_v61 }
 0x34b   :  { %1318 = vxpose.xlu1.b32.end [16/16] %v498_v62, 128  ;;  %v1255_v0 = vpop.trf.xlu1  ;;  %1286 = vxpose.xlu0.b32.end [16/16] %v422_v63, 128  ;;  %v1223_v1 = vpop.trf.xlu0  ;;  %v500_v62 = vld [vmem:[#allocation2 + $0xee8] sm:$0xff]  ;;  %v499_v63 = vld [vmem:[#allocation2 + $0xee0] sm:$0xff] }
 0x34c   :  { %1879 = vst [vmem:[#allocation5 + $0xd00] sm:$0xff] %v1255_v0  ;;  %1847 = vst [vmem:[#allocation5 + $0xc00] sm:$0xff] %v1223_v1 }
 0x34f   :  { %1367 = vxpose.xlu1.b32.start [1/16] %v425_v2, 128  ;;  %v1256_v4 = vpop.trf.xlu1  ;;  %1335 = vxpose.xlu0.b32.start [1/16] %v424_v3, 128  ;;  %v1224_v5 = vpop.trf.xlu0  ;;  %v427_v2 = vld [vmem:[#allocation2 + $0xca0] sm:$0xff]  ;;  %v426_v3 = vld [vmem:[#allocation2 + $0xc98] sm:$0xff] }
 0x350   :  { %1881 = vst [vmem:[#allocation5 + $0xd10] sm:$0xff] %v1256_v4  ;;  %1849 = vst [vmem:[#allocation5 + $0xc10] sm:$0xff] %v1224_v5 }
 0x353   :  { %1368 = vxpose.xlu1.b32.cont [2/16] %v430_v6, 128  ;;  %v1257_v8 = vpop.trf.xlu1  ;;  %1336 = vxpose.xlu0.b32.cont [2/16] %v429_v7, 128  ;;  %v1225_v9 = vpop.trf.xlu0  ;;  %v432_v6 = vld [vmem:[#allocation2 + $0xcc8] sm:$0xff]  ;;  %v431_v7 = vld [vmem:[#allocation2 + $0xcc0] sm:$0xff] }
 0x354   :  { %1883 = vst [vmem:[#allocation5 + $0xd20] sm:$0xff] %v1257_v8  ;;  %1851 = vst [vmem:[#allocation5 + $0xc20] sm:$0xff] %v1225_v9 }
 0x357   :  { %1369 = vxpose.xlu1.b32.cont [3/16] %v435_v10, 128  ;;  %v1258_v12 = vpop.trf.xlu1  ;;  %1337 = vxpose.xlu0.b32.cont [3/16] %v434_v11, 128  ;;  %v1226_v13 = vpop.trf.xlu0  ;;  %v437_v10 = vld [vmem:[#allocation2 + $0xcf0] sm:$0xff]  ;;  %v436_v11 = vld [vmem:[#allocation2 + $0xce8] sm:$0xff] }
 0x358   :  { %1885 = vst [vmem:[#allocation5 + $0xd30] sm:$0xff] %v1258_v12  ;;  %1853 = vst [vmem:[#allocation5 + $0xc30] sm:$0xff] %v1226_v13 }
 0x35b   :  { %1370 = vxpose.xlu1.b32.cont [4/16] %v440_v14, 128  ;;  %v1259_v16 = vpop.trf.xlu1  ;;  %1338 = vxpose.xlu0.b32.cont [4/16] %v439_v15, 128  ;;  %v1227_v17 = vpop.trf.xlu0  ;;  %v442_v14 = vld [vmem:[#allocation2 + $0xd18] sm:$0xff]  ;;  %v441_v15 = vld [vmem:[#allocation2 + $0xd10] sm:$0xff] }
 0x35c   :  { %1887 = vst [vmem:[#allocation5 + $0xd40] sm:$0xff] %v1259_v16  ;;  %1855 = vst [vmem:[#allocation5 + $0xc40] sm:$0xff] %v1227_v17 }
 0x35f   :  { %1371 = vxpose.xlu1.b32.cont [5/16] %v445_v18, 128  ;;  %v1260_v20 = vpop.trf.xlu1  ;;  %1339 = vxpose.xlu0.b32.cont [5/16] %v444_v19, 128  ;;  %v1228_v21 = vpop.trf.xlu0  ;;  %v447_v18 = vld [vmem:[#allocation2 + $0xd40] sm:$0xff]  ;;  %v446_v19 = vld [vmem:[#allocation2 + $0xd38] sm:$0xff] }
 0x360   :  { %1889 = vst [vmem:[#allocation5 + $0xd50] sm:$0xff] %v1260_v20  ;;  %1857 = vst [vmem:[#allocation5 + $0xc50] sm:$0xff] %v1228_v21 }
 0x363   :  { %1372 = vxpose.xlu1.b32.cont [6/16] %v450_v22, 128  ;;  %v1261_v24 = vpop.trf.xlu1  ;;  %1340 = vxpose.xlu0.b32.cont [6/16] %v449_v23, 128  ;;  %v1229_v25 = vpop.trf.xlu0  ;;  %v452_v22 = vld [vmem:[#allocation2 + $0xd68] sm:$0xff]  ;;  %v451_v23 = vld [vmem:[#allocation2 + $0xd60] sm:$0xff] }
 0x364   :  { %1891 = vst [vmem:[#allocation5 + $0xd60] sm:$0xff] %v1261_v24  ;;  %1859 = vst [vmem:[#allocation5 + $0xc60] sm:$0xff] %v1229_v25 }
 0x367   :  { %1373 = vxpose.xlu1.b32.cont [7/16] %v455_v26, 128  ;;  %v1262_v28 = vpop.trf.xlu1  ;;  %1341 = vxpose.xlu0.b32.cont [7/16] %v454_v27, 128  ;;  %v1230_v29 = vpop.trf.xlu0  ;;  %v457_v26 = vld [vmem:[#allocation2 + $0xd90] sm:$0xff]  ;;  %v456_v27 = vld [vmem:[#allocation2 + $0xd88] sm:$0xff] }
 0x368   :  { %1893 = vst [vmem:[#allocation5 + $0xd70] sm:$0xff] %v1262_v28  ;;  %1861 = vst [vmem:[#allocation5 + $0xc70] sm:$0xff] %v1230_v29 }
 0x36b   :  { %1374 = vxpose.xlu1.b32.cont [8/16] %v460_v30, 128  ;;  %v1263_v32 = vpop.trf.xlu1  ;;  %1342 = vxpose.xlu0.b32.cont [8/16] %v459_v31, 128  ;;  %v1231_v33 = vpop.trf.xlu0  ;;  %v462_v30 = vld [vmem:[#allocation2 + $0xdb8] sm:$0xff]  ;;  %v461_v31 = vld [vmem:[#allocation2 + $0xdb0] sm:$0xff] }
 0x36c   :  { %1895 = vst [vmem:[#allocation5 + $0xd80] sm:$0xff] %v1263_v32  ;;  %1863 = vst [vmem:[#allocation5 + $0xc80] sm:$0xff] %v1231_v33 }
 0x36f   :  { %1375 = vxpose.xlu1.b32.cont [9/16] %v465_v34, 128  ;;  %v1264_v36 = vpop.trf.xlu1  ;;  %1343 = vxpose.xlu0.b32.cont [9/16] %v464_v35, 128  ;;  %v1232_v37 = vpop.trf.xlu0  ;;  %v467_v34 = vld [vmem:[#allocation2 + $0xde0] sm:$0xff]  ;;  %v466_v35 = vld [vmem:[#allocation2 + $0xdd8] sm:$0xff] }
 0x370   :  { %1897 = vst [vmem:[#allocation5 + $0xd90] sm:$0xff] %v1264_v36  ;;  %1865 = vst [vmem:[#allocation5 + $0xc90] sm:$0xff] %v1232_v37 }
 0x373   :  { %1376 = vxpose.xlu1.b32.cont [10/16] %v470_v38, 128  ;;  %v1265_v40 = vpop.trf.xlu1  ;;  %1344 = vxpose.xlu0.b32.cont [10/16] %v469_v39, 128  ;;  %v1233_v41 = vpop.trf.xlu0  ;;  %v472_v38 = vld [vmem:[#allocation2 + $0xe08] sm:$0xff]  ;;  %v471_v39 = vld [vmem:[#allocation2 + $0xe00] sm:$0xff] }
 0x374   :  { %1899 = vst [vmem:[#allocation5 + $0xda0] sm:$0xff] %v1265_v40  ;;  %1867 = vst [vmem:[#allocation5 + $0xca0] sm:$0xff] %v1233_v41 }
 0x377   :  { %1377 = vxpose.xlu1.b32.cont [11/16] %v475_v42, 128  ;;  %v1266_v44 = vpop.trf.xlu1  ;;  %1345 = vxpose.xlu0.b32.cont [11/16] %v474_v43, 128  ;;  %v1234_v45 = vpop.trf.xlu0  ;;  %v477_v42 = vld [vmem:[#allocation2 + $0xe30] sm:$0xff]  ;;  %v476_v43 = vld [vmem:[#allocation2 + $0xe28] sm:$0xff] }
 0x378   :  { %1901 = vst [vmem:[#allocation5 + $0xdb0] sm:$0xff] %v1266_v44  ;;  %1869 = vst [vmem:[#allocation5 + $0xcb0] sm:$0xff] %v1234_v45 }
 0x37b   :  { %1378 = vxpose.xlu1.b32.cont [12/16] %v480_v46, 128  ;;  %v1267_v48 = vpop.trf.xlu1  ;;  %1346 = vxpose.xlu0.b32.cont [12/16] %v479_v47, 128  ;;  %v1235_v49 = vpop.trf.xlu0  ;;  %v482_v46 = vld [vmem:[#allocation2 + $0xe58] sm:$0xff]  ;;  %v481_v47 = vld [vmem:[#allocation2 + $0xe50] sm:$0xff] }
 0x37c   :  { %1903 = vst [vmem:[#allocation5 + $0xdc0] sm:$0xff] %v1267_v48  ;;  %1871 = vst [vmem:[#allocation5 + $0xcc0] sm:$0xff] %v1235_v49 }
 0x37f   :  { %1379 = vxpose.xlu1.b32.cont [13/16] %v485_v50, 128  ;;  %v1268_v52 = vpop.trf.xlu1  ;;  %1347 = vxpose.xlu0.b32.cont [13/16] %v484_v51, 128  ;;  %v1236_v53 = vpop.trf.xlu0  ;;  %v487_v50 = vld [vmem:[#allocation2 + $0xe80] sm:$0xff]  ;;  %v486_v51 = vld [vmem:[#allocation2 + $0xe78] sm:$0xff] }
 0x380   :  { %1905 = vst [vmem:[#allocation5 + $0xdd0] sm:$0xff] %v1268_v52  ;;  %1873 = vst [vmem:[#allocation5 + $0xcd0] sm:$0xff] %v1236_v53 }
 0x383   :  { %1380 = vxpose.xlu1.b32.cont [14/16] %v490_v54, 128  ;;  %v1269_v56 = vpop.trf.xlu1  ;;  %1348 = vxpose.xlu0.b32.cont [14/16] %v489_v55, 128  ;;  %v1237_v57 = vpop.trf.xlu0  ;;  %v492_v54 = vld [vmem:[#allocation2 + $0xea8] sm:$0xff]  ;;  %v491_v55 = vld [vmem:[#allocation2 + $0xea0] sm:$0xff] }
 0x384   :  { %1907 = vst [vmem:[#allocation5 + $0xde0] sm:$0xff] %v1269_v56  ;;  %1875 = vst [vmem:[#allocation5 + $0xce0] sm:$0xff] %v1237_v57 }
 0x387   :  { %1381 = vxpose.xlu1.b32.cont [15/16] %v495_v58, 128  ;;  %v1270_v60 = vpop.trf.xlu1  ;;  %1349 = vxpose.xlu0.b32.cont [15/16] %v494_v59, 128  ;;  %v1238_v61 = vpop.trf.xlu0  ;;  %v497_v58 = vld [vmem:[#allocation2 + $0xed0] sm:$0xff]  ;;  %v496_v59 = vld [vmem:[#allocation2 + $0xec8] sm:$0xff] }
 0x388   :  { %1909 = vst [vmem:[#allocation5 + $0xdf0] sm:$0xff] %v1270_v60  ;;  %1877 = vst [vmem:[#allocation5 + $0xcf0] sm:$0xff] %v1238_v61 }
 0x38b   :  { %1382 = vxpose.xlu1.b32.end [16/16] %v500_v62, 128  ;;  %v1319_v0 = vpop.trf.xlu1  ;;  %1350 = vxpose.xlu0.b32.end [16/16] %v499_v63, 128  ;;  %v1287_v1 = vpop.trf.xlu0  ;;  %v502_v62 = vld [vmem:[#allocation2 + $0xef8] sm:$0xff]  ;;  %v501_v63 = vld [vmem:[#allocation2 + $0xef0] sm:$0xff] }
 0x38c   :  { %1784 = vst [vmem:[#allocation5 + $0xa08] sm:$0xff] %v1319_v0  ;;  %1911 = vst [vmem:[#allocation5 + $0xe00] sm:$0xff] %v1287_v1 }
 0x38f   :  { %1431 = vxpose.xlu1.b32.start [1/16] %v427_v2, 128  ;;  %v1320_v4 = vpop.trf.xlu1  ;;  %1399 = vxpose.xlu0.b32.start [1/16] %v426_v3, 128  ;;  %v1288_v5 = vpop.trf.xlu0 }
 0x390   :  { %1786 = vst [vmem:[#allocation5 + $0xa18] sm:$0xff] %v1320_v4  ;;  %1913 = vst [vmem:[#allocation5 + $0xe10] sm:$0xff] %v1288_v5 }
 0x393   :  { %1432 = vxpose.xlu1.b32.cont [2/16] %v432_v6, 128  ;;  %v1321_v8 = vpop.trf.xlu1  ;;  %1400 = vxpose.xlu0.b32.cont [2/16] %v431_v7, 128  ;;  %v1289_v9 = vpop.trf.xlu0 }
 0x394   :  { %1788 = vst [vmem:[#allocation5 + $0xa28] sm:$0xff] %v1321_v8  ;;  %1915 = vst [vmem:[#allocation5 + $0xe20] sm:$0xff] %v1289_v9 }
 0x397   :  { %1433 = vxpose.xlu1.b32.cont [3/16] %v437_v10, 128  ;;  %v1322_v12 = vpop.trf.xlu1  ;;  %1401 = vxpose.xlu0.b32.cont [3/16] %v436_v11, 128  ;;  %v1290_v13 = vpop.trf.xlu0 }
 0x398   :  { %1790 = vst [vmem:[#allocation5 + $0xa38] sm:$0xff] %v1322_v12  ;;  %1917 = vst [vmem:[#allocation5 + $0xe30] sm:$0xff] %v1290_v13 }
 0x39b   :  { %1434 = vxpose.xlu1.b32.cont [4/16] %v442_v14, 128  ;;  %v1323_v16 = vpop.trf.xlu1  ;;  %1402 = vxpose.xlu0.b32.cont [4/16] %v441_v15, 128  ;;  %v1291_v17 = vpop.trf.xlu0 }
 0x39c   :  { %1792 = vst [vmem:[#allocation5 + $0xa48] sm:$0xff] %v1323_v16  ;;  %1919 = vst [vmem:[#allocation5 + $0xe40] sm:$0xff] %v1291_v17 }
 0x39f   :  { %1435 = vxpose.xlu1.b32.cont [5/16] %v447_v18, 128  ;;  %v1324_v20 = vpop.trf.xlu1  ;;  %1403 = vxpose.xlu0.b32.cont [5/16] %v446_v19, 128  ;;  %v1292_v21 = vpop.trf.xlu0 }
 0x3a0   :  { %1794 = vst [vmem:[#allocation5 + $0xa58] sm:$0xff] %v1324_v20  ;;  %1921 = vst [vmem:[#allocation5 + $0xe50] sm:$0xff] %v1292_v21 }
 0x3a3   :  { %1436 = vxpose.xlu1.b32.cont [6/16] %v452_v22, 128  ;;  %v1325_v24 = vpop.trf.xlu1  ;;  %1404 = vxpose.xlu0.b32.cont [6/16] %v451_v23, 128  ;;  %v1293_v25 = vpop.trf.xlu0 }
 0x3a4   :  { %1796 = vst [vmem:[#allocation5 + $0xa68] sm:$0xff] %v1325_v24  ;;  %1923 = vst [vmem:[#allocation5 + $0xe60] sm:$0xff] %v1293_v25 }
 0x3a7   :  { %1437 = vxpose.xlu1.b32.cont [7/16] %v457_v26, 128  ;;  %v1326_v28 = vpop.trf.xlu1  ;;  %1405 = vxpose.xlu0.b32.cont [7/16] %v456_v27, 128  ;;  %v1294_v29 = vpop.trf.xlu0 }
 0x3a8   :  { %1798 = vst [vmem:[#allocation5 + $0xa78] sm:$0xff] %v1326_v28  ;;  %1925 = vst [vmem:[#allocation5 + $0xe70] sm:$0xff] %v1294_v29 }
 0x3ab   :  { %1438 = vxpose.xlu1.b32.cont [8/16] %v462_v30, 128  ;;  %v1327_v32 = vpop.trf.xlu1  ;;  %1406 = vxpose.xlu0.b32.cont [8/16] %v461_v31, 128  ;;  %v1295_v33 = vpop.trf.xlu0 }
 0x3ac   :  { %1800 = vst [vmem:[#allocation5 + $0xa88] sm:$0xff] %v1327_v32  ;;  %1927 = vst [vmem:[#allocation5 + $0xe80] sm:$0xff] %v1295_v33 }
 0x3af   :  { %1439 = vxpose.xlu1.b32.cont [9/16] %v467_v34, 128  ;;  %v1328_v36 = vpop.trf.xlu1  ;;  %1407 = vxpose.xlu0.b32.cont [9/16] %v466_v35, 128  ;;  %v1296_v37 = vpop.trf.xlu0 }
 0x3b0   :  { %1802 = vst [vmem:[#allocation5 + $0xa98] sm:$0xff] %v1328_v36  ;;  %1929 = vst [vmem:[#allocation5 + $0xe90] sm:$0xff] %v1296_v37 }
 0x3b3   :  { %1440 = vxpose.xlu1.b32.cont [10/16] %v472_v38, 128  ;;  %v1329_v40 = vpop.trf.xlu1  ;;  %1408 = vxpose.xlu0.b32.cont [10/16] %v471_v39, 128  ;;  %v1297_v41 = vpop.trf.xlu0 }
 0x3b4   :  { %1804 = vst [vmem:[#allocation5 + $0xaa8] sm:$0xff] %v1329_v40  ;;  %1931 = vst [vmem:[#allocation5 + $0xea0] sm:$0xff] %v1297_v41 }
 0x3b7   :  { %1441 = vxpose.xlu1.b32.cont [11/16] %v477_v42, 128  ;;  %v1330_v44 = vpop.trf.xlu1  ;;  %1409 = vxpose.xlu0.b32.cont [11/16] %v476_v43, 128  ;;  %v1298_v45 = vpop.trf.xlu0 }
 0x3b8   :  { %1806 = vst [vmem:[#allocation5 + $0xab8] sm:$0xff] %v1330_v44  ;;  %1933 = vst [vmem:[#allocation5 + $0xeb0] sm:$0xff] %v1298_v45 }
 0x3bb   :  { %1442 = vxpose.xlu1.b32.cont [12/16] %v482_v46, 128  ;;  %v1331_v48 = vpop.trf.xlu1  ;;  %1410 = vxpose.xlu0.b32.cont [12/16] %v481_v47, 128  ;;  %v1299_v49 = vpop.trf.xlu0 }
 0x3bc   :  { %1808 = vst [vmem:[#allocation5 + $0xac8] sm:$0xff] %v1331_v48  ;;  %1935 = vst [vmem:[#allocation5 + $0xec0] sm:$0xff] %v1299_v49 }
 0x3bf   :  { %1443 = vxpose.xlu1.b32.cont [13/16] %v487_v50, 128  ;;  %v1332_v52 = vpop.trf.xlu1  ;;  %1411 = vxpose.xlu0.b32.cont [13/16] %v486_v51, 128  ;;  %v1300_v53 = vpop.trf.xlu0 }
 0x3c0   :  { %1810 = vst [vmem:[#allocation5 + $0xad8] sm:$0xff] %v1332_v52  ;;  %1937 = vst [vmem:[#allocation5 + $0xed0] sm:$0xff] %v1300_v53 }
 0x3c3   :  { %1444 = vxpose.xlu1.b32.cont [14/16] %v492_v54, 128  ;;  %v1333_v56 = vpop.trf.xlu1  ;;  %1412 = vxpose.xlu0.b32.cont [14/16] %v491_v55, 128  ;;  %v1301_v57 = vpop.trf.xlu0 }
 0x3c4   :  { %1812 = vst [vmem:[#allocation5 + $0xae8] sm:$0xff] %v1333_v56  ;;  %1939 = vst [vmem:[#allocation5 + $0xee0] sm:$0xff] %v1301_v57 }
 0x3c7   :  { %1445 = vxpose.xlu1.b32.cont [15/16] %v497_v58, 128  ;;  %v1334_v60 = vpop.trf.xlu1  ;;  %1413 = vxpose.xlu0.b32.cont [15/16] %v496_v59, 128  ;;  %v1302_v61 = vpop.trf.xlu0 }
 0x3c8   :  { %1814 = vst [vmem:[#allocation5 + $0xaf8] sm:$0xff] %v1334_v60  ;;  %1941 = vst [vmem:[#allocation5 + $0xef0] sm:$0xff] %v1302_v61 }
 0x3cb   :  { %1446 = vxpose.xlu1.b32.end [16/16] %v502_v62, 128  ;;  %v1383_v0 = vpop.trf.xlu1  ;;  %1414 = vxpose.xlu0.b32.end [16/16] %v501_v63, 128  ;;  %v1351_v1 = vpop.trf.xlu0 }
 0x3cc   :  { %1848 = vst [vmem:[#allocation5 + $0xc08] sm:$0xff] %v1383_v0  ;;  %1816 = vst [vmem:[#allocation5 + $0xb08] sm:$0xff] %v1351_v1 }
 0x3cf   :  { %v1384_v2 = vpop.trf.xlu1  ;;  %v1352_v3 = vpop.trf.xlu0 }
 0x3d0   :  { %1850 = vst [vmem:[#allocation5 + $0xc18] sm:$0xff] %v1384_v2  ;;  %1818 = vst [vmem:[#allocation5 + $0xb18] sm:$0xff] %v1352_v3 }
 0x3d3   :  { %v1385_v4 = vpop.trf.xlu1  ;;  %v1353_v5 = vpop.trf.xlu0 }
 0x3d4   :  { %1852 = vst [vmem:[#allocation5 + $0xc28] sm:$0xff] %v1385_v4  ;;  %1820 = vst [vmem:[#allocation5 + $0xb28] sm:$0xff] %v1353_v5 }
 0x3d7   :  { %v1386_v6 = vpop.trf.xlu1  ;;  %v1354_v7 = vpop.trf.xlu0 }
 0x3d8   :  { %1854 = vst [vmem:[#allocation5 + $0xc38] sm:$0xff] %v1386_v6  ;;  %1822 = vst [vmem:[#allocation5 + $0xb38] sm:$0xff] %v1354_v7 }
 0x3db   :  { %v1387_v8 = vpop.trf.xlu1  ;;  %v1355_v9 = vpop.trf.xlu0 }
 0x3dc   :  { %1856 = vst [vmem:[#allocation5 + $0xc48] sm:$0xff] %v1387_v8  ;;  %1824 = vst [vmem:[#allocation5 + $0xb48] sm:$0xff] %v1355_v9 }
 0x3df   :  { %v1388_v10 = vpop.trf.xlu1  ;;  %v1356_v11 = vpop.trf.xlu0 }
 0x3e0   :  { %1858 = vst [vmem:[#allocation5 + $0xc58] sm:$0xff] %v1388_v10  ;;  %1826 = vst [vmem:[#allocation5 + $0xb58] sm:$0xff] %v1356_v11 }
 0x3e3   :  { %v1389_v12 = vpop.trf.xlu1  ;;  %v1357_v13 = vpop.trf.xlu0 }
 0x3e4   :  { %1860 = vst [vmem:[#allocation5 + $0xc68] sm:$0xff] %v1389_v12  ;;  %1828 = vst [vmem:[#allocation5 + $0xb68] sm:$0xff] %v1357_v13 }
 0x3e7   :  { %v1390_v14 = vpop.trf.xlu1  ;;  %v1358_v15 = vpop.trf.xlu0 }
 0x3e8   :  { %1862 = vst [vmem:[#allocation5 + $0xc78] sm:$0xff] %v1390_v14  ;;  %1830 = vst [vmem:[#allocation5 + $0xb78] sm:$0xff] %v1358_v15 }
 0x3eb   :  { %v1391_v16 = vpop.trf.xlu1  ;;  %v1359_v17 = vpop.trf.xlu0 }
 0x3ec   :  { %1864 = vst [vmem:[#allocation5 + $0xc88] sm:$0xff] %v1391_v16  ;;  %1832 = vst [vmem:[#allocation5 + $0xb88] sm:$0xff] %v1359_v17 }
 0x3ef   :  { %v1392_v18 = vpop.trf.xlu1  ;;  %v1360_v19 = vpop.trf.xlu0 }
 0x3f0   :  { %1866 = vst [vmem:[#allocation5 + $0xc98] sm:$0xff] %v1392_v18  ;;  %1834 = vst [vmem:[#allocation5 + $0xb98] sm:$0xff] %v1360_v19 }
 0x3f3   :  { %v1393_v20 = vpop.trf.xlu1  ;;  %v1361_v21 = vpop.trf.xlu0 }
 0x3f4   :  { %1868 = vst [vmem:[#allocation5 + $0xca8] sm:$0xff] %v1393_v20  ;;  %1836 = vst [vmem:[#allocation5 + $0xba8] sm:$0xff] %v1361_v21 }
 0x3f7   :  { %v1394_v22 = vpop.trf.xlu1  ;;  %v1362_v23 = vpop.trf.xlu0 }
 0x3f8   :  { %1870 = vst [vmem:[#allocation5 + $0xcb8] sm:$0xff] %v1394_v22  ;;  %1838 = vst [vmem:[#allocation5 + $0xbb8] sm:$0xff] %v1362_v23 }
 0x3fb   :  { %v1395_v24 = vpop.trf.xlu1  ;;  %v1363_v25 = vpop.trf.xlu0 }
 0x3fc   :  { %1872 = vst [vmem:[#allocation5 + $0xcc8] sm:$0xff] %v1395_v24  ;;  %1840 = vst [vmem:[#allocation5 + $0xbc8] sm:$0xff] %v1363_v25 }
 0x3ff   :  { %v1396_v26 = vpop.trf.xlu1  ;;  %v1364_v27 = vpop.trf.xlu0 }
 0x400   :  { %1874 = vst [vmem:[#allocation5 + $0xcd8] sm:$0xff] %v1396_v26  ;;  %1842 = vst [vmem:[#allocation5 + $0xbd8] sm:$0xff] %v1364_v27 }
 0x403   :  { %v1397_v28 = vpop.trf.xlu1  ;;  %v1365_v29 = vpop.trf.xlu0 }
 0x404   :  { %1876 = vst [vmem:[#allocation5 + $0xce8] sm:$0xff] %v1397_v28  ;;  %1844 = vst [vmem:[#allocation5 + $0xbe8] sm:$0xff] %v1365_v29 }
 0x407   :  { %v1398_v30 = vpop.trf.xlu1  ;;  %v1366_v31 = vpop.trf.xlu0 }
 0x408   :  { %1878 = vst [vmem:[#allocation5 + $0xcf8] sm:$0xff] %v1398_v30  ;;  %1846 = vst [vmem:[#allocation5 + $0xbf8] sm:$0xff] %v1366_v31 }
 0x40b   :  { %v1447_v32 = vpop.trf.xlu1  ;;  %v1415_v33 = vpop.trf.xlu0 }
 0x40c   :  { %1912 = vst [vmem:[#allocation5 + $0xe08] sm:$0xff] %v1447_v32  ;;  %1880 = vst [vmem:[#allocation5 + $0xd08] sm:$0xff] %v1415_v33 }
 0x40f   :  { %v1448_v34 = vpop.trf.xlu1  ;;  %v1416_v35 = vpop.trf.xlu0 }
 0x410   :  { %1914 = vst [vmem:[#allocation5 + $0xe18] sm:$0xff] %v1448_v34  ;;  %1882 = vst [vmem:[#allocation5 + $0xd18] sm:$0xff] %v1416_v35 }
 0x413   :  { %v1449_v36 = vpop.trf.xlu1  ;;  %v1417_v37 = vpop.trf.xlu0 }
 0x414   :  { %1916 = vst [vmem:[#allocation5 + $0xe28] sm:$0xff] %v1449_v36  ;;  %1884 = vst [vmem:[#allocation5 + $0xd28] sm:$0xff] %v1417_v37 }
 0x417   :  { %v1450_v38 = vpop.trf.xlu1  ;;  %v1418_v39 = vpop.trf.xlu0 }
 0x418   :  { %1918 = vst [vmem:[#allocation5 + $0xe38] sm:$0xff] %v1450_v38  ;;  %1886 = vst [vmem:[#allocation5 + $0xd38] sm:$0xff] %v1418_v39 }
 0x41b   :  { %v1451_v40 = vpop.trf.xlu1  ;;  %v1419_v41 = vpop.trf.xlu0 }
 0x41c   :  { %1920 = vst [vmem:[#allocation5 + $0xe48] sm:$0xff] %v1451_v40  ;;  %1888 = vst [vmem:[#allocation5 + $0xd48] sm:$0xff] %v1419_v41 }
 0x41f   :  { %v1452_v42 = vpop.trf.xlu1  ;;  %v1420_v43 = vpop.trf.xlu0 }
 0x420   :  { %1922 = vst [vmem:[#allocation5 + $0xe58] sm:$0xff] %v1452_v42  ;;  %1890 = vst [vmem:[#allocation5 + $0xd58] sm:$0xff] %v1420_v43 }
 0x423   :  { %v1453_v44 = vpop.trf.xlu1  ;;  %v1421_v45 = vpop.trf.xlu0 }
 0x424   :  { %1924 = vst [vmem:[#allocation5 + $0xe68] sm:$0xff] %v1453_v44  ;;  %1892 = vst [vmem:[#allocation5 + $0xd68] sm:$0xff] %v1421_v45 }
 0x427   :  { %v1454_v46 = vpop.trf.xlu1  ;;  %v1422_v47 = vpop.trf.xlu0 }
 0x428   :  { %1926 = vst [vmem:[#allocation5 + $0xe78] sm:$0xff] %v1454_v46  ;;  %1894 = vst [vmem:[#allocation5 + $0xd78] sm:$0xff] %v1422_v47 }
 0x42b   :  { %v1455_v48 = vpop.trf.xlu1  ;;  %v1423_v49 = vpop.trf.xlu0 }
 0x42c   :  { %1928 = vst [vmem:[#allocation5 + $0xe88] sm:$0xff] %v1455_v48  ;;  %1896 = vst [vmem:[#allocation5 + $0xd88] sm:$0xff] %v1423_v49 }
 0x42f   :  { %v1456_v50 = vpop.trf.xlu1  ;;  %v1424_v51 = vpop.trf.xlu0 }
 0x430   :  { %1930 = vst [vmem:[#allocation5 + $0xe98] sm:$0xff] %v1456_v50  ;;  %1898 = vst [vmem:[#allocation5 + $0xd98] sm:$0xff] %v1424_v51 }
 0x433   :  { %v1457_v52 = vpop.trf.xlu1  ;;  %v1425_v53 = vpop.trf.xlu0 }
 0x434   :  { %1932 = vst [vmem:[#allocation5 + $0xea8] sm:$0xff] %v1457_v52  ;;  %1900 = vst [vmem:[#allocation5 + $0xda8] sm:$0xff] %v1425_v53 }
 0x437   :  { %v1458_v54 = vpop.trf.xlu1  ;;  %v1426_v55 = vpop.trf.xlu0 }
 0x438   :  { %1934 = vst [vmem:[#allocation5 + $0xeb8] sm:$0xff] %v1458_v54  ;;  %1902 = vst [vmem:[#allocation5 + $0xdb8] sm:$0xff] %v1426_v55 }
 0x43b   :  { %v1459_v56 = vpop.trf.xlu1  ;;  %v1427_v57 = vpop.trf.xlu0 }
 0x43c   :  { %1936 = vst [vmem:[#allocation5 + $0xec8] sm:$0xff] %v1459_v56  ;;  %1904 = vst [vmem:[#allocation5 + $0xdc8] sm:$0xff] %v1427_v57 }
 0x43f   :  { %v1460_v58 = vpop.trf.xlu1  ;;  %v1428_v59 = vpop.trf.xlu0 }
 0x440   :  { %1938 = vst [vmem:[#allocation5 + $0xed8] sm:$0xff] %v1460_v58  ;;  %1906 = vst [vmem:[#allocation5 + $0xdd8] sm:$0xff] %v1428_v59 }
 0x443   :  { %v1461_v60 = vpop.trf.xlu1  ;;  %v1429_v61 = vpop.trf.xlu0 }
 0x444   :  { %1940 = vst [vmem:[#allocation5 + $0xee8] sm:$0xff] %v1461_v60  ;;  %1908 = vst [vmem:[#allocation5 + $0xde8] sm:$0xff] %v1429_v61 }
 0x447   :  { %v1462_v62 = vpop.trf.xlu1  ;;  %v1430_v63 = vpop.trf.xlu0 }
 0x448   :  { %1942 = vst [vmem:[#allocation5 + $0xef8] sm:$0xff] %v1462_v62  ;;  %1910 = vst [vmem:[#allocation5 + $0xdf8] sm:$0xff] %v1430_v63 }
 0x449   :  { %1997 = shalt.err (!%p1994_p9)
}
 0x44a   :  { %s2014_s15 = smov 256   ;;  %s2015_s16 = smov 16  }
 0x44b   :  { %1954 = dma.vmem_to_hbm [thread:$0]  %s1949_s13, 61440, %s2033_s1, [#allocation4], %s2014_s15, %s2014_s15, %s2015_s16  }
 0x44c   :  { %2008 = dma.done.wait [#allocation4], 61440  }
 0x44d   :  { %2009 = vsyncadd [#allocation4], 4294905856 }
 0x44e   :  { %1958 = vsyncpa [#allocation3], 1 }
 0x44f   :  { %1959 = vsyncpa [#allocation4], 1 }

</bundles_post_ra>
